<compile_context>
chip_gen: v7x
topology: tpu7x:2x2x1
jax: 0.10.0
libtpu: 0.0.40
codegen_flags: <defaults>
</compile_context>

<pallas_src>
import numpy as np

import jax
import jax.numpy as jnp
from jax.experimental import pallas as pl
from jax.experimental.pallas import tpu as pltpu

LATENT_SIZE = 32
XYZ_DIM = 3
DEC_DIMS = [512] * 8          # ImplicitMap hidden widths
LATENT_IN = (4,)              # skip-connection layer index
SOFTPLUS_BETA = 100.0
SQRT2 = float(np.sqrt(2.0))

_VMEM_LIMIT = 48 * 1024 * 1024   # fits v5e/v6e (128 MiB) and v7x (64 MiB)


# ----------------------------------------------------------------------------
# small helpers
# ----------------------------------------------------------------------------
def _round_up(x, m):
    return ((x + m - 1) // m) * m


def _const_spec(shape, single_buffer):
    """BlockSpec for a grid-invariant (weight) operand.

    With single_buffer=True the operand is requested single-buffered
    (pipeline_mode=pl.Buffered(1)) so the 3.5 MiB packed weight block is not
    double-buffered in VMEM (matters most on v7x's 64 MiB VMEM).
    """
    index_map = lambda *ix, z=(0,) * len(shape): z
    if single_buffer:
        return pl.BlockSpec(shape, index_map, pipeline_mode=pl.Buffered(1))
    return pl.BlockSpec(shape, index_map)


def _call_first_ok(make_call, *args):
    """Try the single-buffered-weights variant; fall back to default buffering
    if this jax build does not accept pipeline_mode / Buffered(1)."""
    try:
        return make_call(True)(*args)
    except Exception:   # pragma: no cover - graceful degradation only
        return make_call(False)(*args)


# ----------------------------------------------------------------------------
# shared math (used by the pure-JAX reference)
# ----------------------------------------------------------------------------
def _softplus_beta(y):
    # nn.Softplus(beta=100): (1/beta) * log(1 + exp(beta*y)), numerically stable
    z = SOFTPLUS_BETA * y
    return (jnp.maximum(z, 0.0) + jnp.log1p(jnp.exp(-jnp.abs(z)))) / SOFTPLUS_BETA


# ----------------------------------------------------------------------------
# Kernel 1: SimplePointnet encoder
# ----------------------------------------------------------------------------
def _encoder_kernel(p_ref,
                    wpos_ref, bpos_ref, w0_ref, b0_ref, w1_ref, b1_ref,
                    w2_ref, b2_ref, w3_ref, b3_ref,
                    wm_ref, bm_ref, ws_ref, bs_ref,
                    mean_ref, std_ref):
    p = p_ref[0]                                              # (N, 3) f32
    relu = lambda x: jnp.maximum(x, 0.0)
    bf16 = lambda x: x.astype(jnp.bfloat16)

    def lin(x, w_ref, b_ref):                                 # weights are bf16 (in, out)
        return (jnp.dot(bf16(x), w_ref[...], preferred_element_type=jnp.float32)
                + b_ref[...])

    net = lin(p, wpos_ref, bpos_ref)                          # (N, 2H)  fc_pos
    net = lin(relu(net), w0_ref, b0_ref)                      # (N, H)   fc_0
    H = net.shape[1]

    # fc_1..fc_3: relu(cat([net, maxpool(net)])) @ W
    #           == relu(net) @ W[:H] + relu(pool) @ W[H:]   (no concat/broadcast)
    for w_ref, b_ref in ((w1_ref, b1_ref), (w2_ref, b2_ref), (w3_ref, b3_ref)):
        a = relu(net)                                         # (N, H)
        pooled = jnp.max(a, axis=0, keepdims=True)            # (1, H)  (= relu(max(net)))
        wt = w_ref[...]                                       # (2H, H) bf16
        net = (jnp.dot(bf16(a), wt[:H, :], preferred_element_type=jnp.float32)
               + jnp.dot(bf16(pooled), wt[H:, :], preferred_element_type=jnp.float32)
               + b_ref[...])                                  # (N, H)

    a = relu(jnp.max(net, axis=0, keepdims=True))             # (1, H) final pool
    mean_ref[0] = lin(a, wm_ref, bm_ref)                      # (1, c_dim)
    std_ref[0] = lin(a, ws_ref, bs_ref)                       # (1, c_dim)


def encoder_forward(points, enc_params):
    """points: (B, N, 3) -> (q_mean, q_std) each (B, latent_size)."""
    # TODO(synk): for very large N, tile over points with a two-pass max-pool
    # (and a second 'parallel' grid axis so v7x's two TensorCores are used
    # when B is small); each program currently holds all N points.
    B, N, D = points.shape
    c_dim = enc_params["wm"].shape[0]

    names = ["wpos", "bpos", "w0", "b0", "w1", "b1", "w2", "b2", "w3", "b3",
             "wm", "bm", "ws", "bs"]
    args = []
    for name in names:
        arr = enc_params[name]
        if name.startswith("w"):
            arr = jnp.transpose(arr).astype(jnp.bfloat16)     # (in, out), bf16 for MXU
        else:
            arr = arr.astype(jnp.float32)
        args.append(arr)

    out_shape = (jax.ShapeDtypeStruct((B, 1, c_dim), jnp.float32),
                 jax.ShapeDtypeStruct((B, 1, c_dim), jnp.float32))
    out_specs = (pl.BlockSpec((1, 1, c_dim), lambda b: (b, 0, 0)),
                 pl.BlockSpec((1, 1, c_dim), lambda b: (b, 0, 0)))

    def make_call(single_buffer):
        in_specs = ([pl.BlockSpec((1, N, D), lambda b: (b, 0, 0))]
                    + [_const_spec(a.shape, single_buffer) for a in args])
        return pl.pallas_call(
            _encoder_kernel,
            grid=(B,),
            in_specs=in_specs,
            out_specs=out_specs,
            out_shape=out_shape,
            compiler_params=pltpu.CompilerParams(
                dimension_semantics=("parallel",),
                vmem_limit_bytes=_VMEM_LIMIT),
        )

    mean, std = _call_first_ok(make_call, points.astype(jnp.float32), *args)
    return mean[:, 0, :], std[:, 0, :]


# ----------------------------------------------------------------------------
# Kernel 2: ImplicitMap decoder with analytic xyz-gradient (compute_grad=True)
# ----------------------------------------------------------------------------
def _implicit_kernel(xyz_ref, lat_ref,
                     w0x_ref, w0l_ref, b0_ref,
                     wmid_ref, bmid_ref,
                     w4x_ref, w4l_ref,
                     w8_ref, b8_ref,
                     out_ref):
    F = wmid_ref.shape[-1]                                    # 512
    xyz = xyz_ref[0]                                          # (TP, 3)  f32
    lat = lat_ref[0]                                          # (1, L)   f32
    TP = xyz.shape[0]
    bf16 = lambda x: x.astype(jnp.bfloat16)

    def act(y):
        """softplus(beta*y)/beta and sigmoid(beta*y); divide goes to the EUP."""
        z = SOFTPLUS_BETA * y
        s = pl.reciprocal(1.0 + jnp.exp(-z), approx=True)     # sigmoid(beta*y)
        sp = jnp.maximum(z, 0.0) - jnp.log(jnp.where(z >= 0.0, s, 1.0 - s))
        return sp * (1.0 / SOFTPLUS_BETA), s

    def sdot(a_bf16, w_bf16):                                 # stacked bf16 MXU matmul, f32 acc
        return jnp.dot(a_bf16.reshape(4 * TP, a_bf16.shape[-1]), w_bf16,
                       preferred_element_type=jnp.float32)

    # ---- layer 0: xyz / latent split; analytic d(.)/d(xyz) init (no matmul) ----
    w0x = w0x_ref[...]                                        # (3, F) f32
    y = (jnp.dot(xyz, w0x, preferred_element_type=jnp.float32)
         + jnp.dot(lat, w0l_ref[...], preferred_element_type=jnp.float32)
         + b0_ref[...])                                       # (TP, F)
    x, s = act(y)
    g = w0x[:, None, :] * s[None, :, :]                       # (3, TP, F)
    # stacked [value; d/dx; d/dy; d/dz] carried as bf16 end-to-end (one cast,
    # no duplicate f32 concat materialization).
    xg = jnp.concatenate([bf16(x)[None], bf16(g)], axis=0)    # (4, TP, F) bf16

    # ---- hidden layers 1..7: one fused matmul per layer for value + Jacobian ----
    for idx in range(wmid_ref.shape[0]):
        y_all = sdot(xg, wmid_ref[idx]).reshape(4, TP, F)     # (4, TP, F) f32
        y = y_all[0] + bmid_ref[idx]                          # value rows
        gy = y_all[1:]                                        # Jacobian rows
        if idx + 1 in LATENT_IN:                              # latent skip (layer 4)
            w4x = w4x_ref[...]                                # (3, F), 1/sqrt2 pre-folded
            y = (y + jnp.dot(xyz, w4x, preferred_element_type=jnp.float32)
                 + jnp.dot(lat, w4l_ref[...], preferred_element_type=jnp.float32))
            gy = gy + w4x[:, None, :]                         # d(skip)/d(xyz) contribution
        x, s = act(y)
        xg = jnp.concatenate([bf16(x)[None], bf16(gy * s[None, :, :])], axis=0)

    # ---- final linear layer (output width 1), packed [pred | grad] output ----
    y_fin = sdot(xg, w8_ref[...])                             # (4*TP, 1) f32
    out_ref[0] = jnp.concatenate(
        [y_fin[:TP] + b8_ref[...],                            # pred
         y_fin[TP:2 * TP], y_fin[2 * TP:3 * TP], y_fin[3 * TP:]],  # grad x/y/z
        axis=1)                                               # (TP, 4)


def prepare_decoder_params(dec_params):
    """Torch-layout [(W(out,in), b(1,out))] -> kernel-ready arrays.

    - weights pre-transposed to (in, out)
    - layer-3 output / layer-4 input zero-padded 477 -> 512 (lane aligned)
    - the skip's 1/sqrt(2) folded into layer-4 weights
    - the 7 hidden 512x512 weights packed into one bf16 (7,512,512) block
    """
    n = len(dec_params)
    d_in = dec_params[0][0].shape[1]                          # 3 + latent
    F = dec_params[1][0].shape[1]                             # 512

    w0t = jnp.transpose(dec_params[0][0])                     # (d_in, F)
    b0 = dec_params[0][1]

    mid_w, mid_b = [], []
    w4x = w4l = None
    for l in range(1, n - 1):                                 # hidden layers 1..7
        w, b = dec_params[l]
        wt = jnp.transpose(w)                                 # (in, out)
        if (l + 1) in LATENT_IN:                              # pad 477 -> 512 outputs
            wt = jnp.pad(wt, ((0, 0), (0, F - wt.shape[1])))
            b = jnp.pad(b, ((0, 0), (0, F - b.shape[1])))
        if l in LATENT_IN:                                    # split skip part, fold 1/sqrt2
            wt = wt / SQRT2
            main = jnp.pad(wt[:F - d_in, :], ((0, d_in), (0, 0)))     # (F, F)
            w4x = wt[F - d_in:F - d_in + XYZ_DIM, :]          # (3, F)
            w4l = wt[F - d_in + XYZ_DIM:, :]                  # (L, F)
            wt = main
        mid_w.append(wt)
        mid_b.append(b)

    return {
        "w0x": w0t[:XYZ_DIM, :].astype(jnp.float32),          # (3, F)
        "w0l": w0t[XYZ_DIM:, :].astype(jnp.float32),          # (L, F)
        "b0": b0.astype(jnp.float32),                         # (1, F)
        "w_mid": jnp.stack(mid_w).astype(jnp.bfloat16),       # (7, F, F)
        "b_mid": jnp.stack(mid_b).astype(jnp.float32),        # (7, 1, F)
        "w4x": w4x.astype(jnp.float32),                       # (3, F)
        "w4l": w4l.astype(jnp.float32),                       # (L, F)
        "w8": jnp.transpose(dec_params[n - 1][0]).astype(jnp.bfloat16),  # (F, 1)
        "b8": dec_params[n - 1][1].astype(jnp.float32),       # (1, 1)
    }


def implicit_map_forward(points, latent, dec_kparams, tile_points=256):
    """points: (B, N, 3), latent: (B, L) -> (pred (B,N,1), grad (B,N,3)).

    Points are padded up to a multiple of the tile (default TP=256 -> 4*TP=1024
    MXU rows per step; 512 can be a small extra win on v5e/v6e).  pred/grad
    come back as one lane-packed (B, Np, 4) slab and are split here.
    """
    B, N, _ = points.shape
    L = latent.shape[-1]
    TP = min(tile_points, _round_up(N, 8))
    Np = _round_up(N, TP)
    if Np != N:
        points = jnp.pad(points, ((0, 0), (0, Np - N), (0, 0)))
    grid = (B, Np // TP)
    lat3 = latent.reshape(B, 1, L).astype(jnp.float32)

    w_names = ["w0x", "w0l", "b0", "w_mid", "b_mid", "w4x", "w4l", "w8", "b8"]
    w_args = [dec_kparams[k] for k in w_names]

    out_shape = jax.ShapeDtypeStruct((B, Np, 4), jnp.float32)
    out_specs = pl.BlockSpec((1, TP, 4), lambda b, t: (b, t, 0))

    def make_call(single_buffer):
        in_specs = ([pl.BlockSpec((1, TP, XYZ_DIM), lambda b, t: (b, t, 0)),
                     pl.BlockSpec((1, 1, L), lambda b, t: (b, 0, 0))]
                    + [_const_spec(a.shape, single_buffer) for a in w_args])
        return pl.pallas_call(
            _implicit_kernel,
            grid=grid,
            in_specs=in_specs,
            out_specs=out_specs,
            out_shape=out_shape,
            compiler_params=pltpu.CompilerParams(
                dimension_semantics=("parallel", "parallel"),
                vmem_limit_bytes=_VMEM_LIMIT),
        )

    packed = _call_first_ok(make_call, points.astype(jnp.float32), lat3, *w_args)
    packed = packed[:, :N]
    return packed[..., 0:1], packed[..., 1:4]


# ----------------------------------------------------------------------------
# Parameter setup (deterministic, synthetic)
# ----------------------------------------------------------------------------
def init_encoder_params(key, latent_size, dim=XYZ_DIM):
    # SimplePointnet(hidden_dim=2*latent_size, c_dim=latent_size, dim=3)
    H = 2 * latent_size
    c_dim = latent_size
    shapes = [("wpos", (2 * H, dim)), ("bpos", (1, 2 * H)),
              ("w0", (H, 2 * H)), ("b0", (1, H)),
              ("w1", (H, 2 * H)), ("b1", (1, H)),
              ("w2", (H, 2 * H)), ("b2", (1, H)),
              ("w3", (H, 2 * H)), ("b3", (1, H)),
              ("wm", (c_dim, H)), ("bm", (1, c_dim)),
              ("ws", (c_dim, H)), ("bs", (1, c_dim))]
    # NOTE: synthetic random init (the torch code zero-inits fc_mean/fc_std,
    # which would make the latent degenerate for this test).
    params = {}
    keys = jax.random.split(key, len(shapes))
    for k, (name, shape) in zip(keys, shapes):
        if name.startswith("w"):
            params[name] = (jax.random.normal(k, shape) /
                            np.sqrt(shape[1])).astype(jnp.float32)
        else:
            params[name] = (0.01 * jax.random.normal(k, shape)).astype(jnp.float32)
    params["bs"] = params["bs"] - 1.0      # keep exp(q_std) modest (torch uses -10)
    return params


def init_decoder_params(key, latent_size):
    # ImplicitMap geometric init; weight_norm is identity on effective weights.
    d_in = latent_size + XYZ_DIM
    dims = [d_in] + DEC_DIMS + [1]
    n_layers = len(dims) - 1
    keys = jax.random.split(key, n_layers)
    params = []
    for l in range(n_layers):
        in_dim = dims[l]
        out_dim = dims[l + 1] - dims[0] if (l + 1) in LATENT_IN else dims[l + 1]
        if l == n_layers - 1:
            w = (np.sqrt(np.pi) / np.sqrt(in_dim)
                 + 1e-5 * jax.random.normal(keys[l], (out_dim, in_dim)))
            b = -1.0 * jnp.ones((1, out_dim))
        else:
            w = jax.random.normal(keys[l], (out_dim, in_dim)) * (
                np.sqrt(2.0) / np.sqrt(out_dim))
            b = jnp.zeros((1, out_dim))
        params.append((w.astype(jnp.float32), b.astype(jnp.float32)))
    return params


# ----------------------------------------------------------------------------
# SALD.forward (training path: encoder + decoder on samples + surface normals)
# ----------------------------------------------------------------------------
def sald_forward(manifold_points, manifold_normals, sample_nonmnfld,
                 enc_params, dec_kparams, sample_key,
                 latent=None, only_encoder_forward=False,
                 only_decoder_forward=False):
    del manifold_normals                       # with_normals = False
    output = {}
    if not only_decoder_forward:
        q_mean, q_std = encoder_forward(manifold_points, enc_params)
        eps = jax.random.normal(sample_key, q_mean.shape, dtype=q_mean.dtype)
        latent = q_mean + jnp.exp(q_std) * eps                 # Normal.rsample
        output["latent_reg"] = (jnp.abs(q_mean).mean(-1)
                                + jnp.abs(q_std + 1.0).mean(-1))
        if only_encoder_forward:
            return latent, q_mean, jnp.exp(q_std)
    elif only_encoder_forward:
        return None, None, None

    if only_decoder_forward:
        # TODO(synk): the kernel always computes the xyz-Jacobian (compute_grad
        # is structurally True); the pred-only path just drops it.
        return implicit_map_forward(manifold_points, latent, dec_kparams)[0]

    # Fuse the two ImplicitMap evaluations (non-manifold samples + surface
    # points) into a single pallas_call: one weight DMA / warm-up, not two.
    M = sample_nonmnfld.shape[1]
    all_pts = jnp.concatenate([sample_nonmnfld, manifold_points], axis=1)
    pred_all, grad_all = implicit_map_forward(all_pts, latent, dec_kparams)
    output["non_mnfld_pred"] = pred_all[:, :M]                 # (B, M, 1)
    output["non_mnfld_pred_grad"] = grad_all[:, :M]            # (B, M, 3)
    if latent is not None:
        output["norm_square_latent"] = (latent ** 2).mean(-1)
    output["grad_on_surface"] = grad_all[:, M:]                # (B, N, 3)
    return output


# ----------------------------------------------------------------------------
# Pure-JAX reference (for correctness check of the Pallas kernels)
# ----------------------------------------------------------------------------
def _ref_encoder(points, p):
    lin = lambda x, w, b: x @ w.T + b
    relu = lambda x: jnp.maximum(x, 0.0)
    net = lin(points, p["wpos"], p["bpos"])
    net = lin(relu(net), p["w0"], p["b0"])
    for wn, bn in (("w1", "b1"), ("w2", "b2"), ("w3", "b3")):
        pooled = jnp.max(net, axis=1, keepdims=True)
        net = jnp.concatenate([net, jnp.broadcast_to(pooled, net.shape)], axis=-1)
        net = lin(relu(net), p[wn], p[bn])
    net = jnp.max(net, axis=1)
    a = relu(net)
    return lin(a, p["wm"], p["bm"]), lin(a, p["ws"], p["bs"])


def _ref_decoder_point(xyz, latent_vec, dec_params):
    x0 = jnp.concatenate([xyz, latent_vec], axis=-1)
    x = x0
    n = len(dec_params)
    for l, (w, b) in enumerate(dec_params):
        if l in LATENT_IN:
            x = jnp.concatenate([x, x0], axis=-1) / SQRT2
        x = x @ w.T + b[0]
        if l < n - 1:
            x = _softplus_beta(x)
    return x[0]


def _ref_implicit(points, latent, dec_params):
    f = lambda xyz, z: _ref_decoder_point(xyz, z, dec_params)
    pred = jax.vmap(lambda pts, z: jax.vmap(lambda q: f(q, z))(pts))(points, latent)
    grad = jax.vmap(lambda pts, z: jax.vmap(lambda q: jax.grad(f)(q, z))(pts))(
        points, latent)
    return pred[..., None], grad


# ----------------------------------------------------------------------------
if __name__ == "__main__":
    key = jax.random.PRNGKey(0)
    k_enc, k_dec, k_pts, k_nrm, k_smp, k_eps = jax.random.split(key, 6)

    B, N, M = 2, 64, 64
    manifold_points = jax.random.normal(k_pts, (B, N, XYZ_DIM), dtype=jnp.float32)
    manifold_normals = jax.random.normal(k_nrm, (B, N, XYZ_DIM), dtype=jnp.float32)
    sample_nonmnfld = jax.random.normal(k_smp, (B, M, XYZ_DIM), dtype=jnp.float32)

    enc_params = init_encoder_params(k_enc, LATENT_SIZE)
    dec_params = init_decoder_params(k_dec, LATENT_SIZE)      # torch-layout weights
    dec_kparams = prepare_decoder_params(dec_params)           # kernel-ready (packed / bf16)

    out = sald_forward(manifold_points, manifold_normals, sample_nonmnfld,
                       enc_params, dec_kparams, k_eps)
    out = jax.tree_util.tree_map(jax.block_until_ready, out)

    # ---- correctness checks vs pure-JAX / autodiff references ----
    # 1) encoder (bf16 MXU operands, f32 accumulation -> bf16-level tolerance)
    q_mean_p, q_std_p = encoder_forward(manifold_points, enc_params)
    q_mean_r, q_std_r = _ref_encoder(manifold_points, enc_params)
    np.testing.assert_allclose(np.asarray(q_mean_p), np.asarray(q_mean_r),
                               rtol=3e-2, atol=2e-2)
    np.testing.assert_allclose(np.asarray(q_std_p), np.asarray(q_std_r),
                               rtol=3e-2, atol=2e-2)

    # 2) decoder: use the same latent the Pallas path sampled; the kernel runs
    #    bf16 MXU operands with f32 accumulation -> looser tolerance.
    eps = jax.random.normal(k_eps, q_mean_p.shape, dtype=jnp.float32)
    latent = q_mean_p + jnp.exp(q_std_p) * eps
    pred_r, grad_r = _ref_implicit(sample_nonmnfld, latent, dec_params)
    _, grad_surf_r = _ref_implicit(manifold_points, latent, dec_params)

    np.testing.assert_allclose(np.asarray(out["non_mnfld_pred"]),
                               np.asarray(pred_r), rtol=5e-2, atol=2e-2)
    np.testing.assert_allclose(np.asarray(out["non_mnfld_pred_grad"]),
                               np.asarray(grad_r), rtol=5e-2, atol=2e-2)
    np.testing.assert_allclose(np.asarray(out["grad_on_surface"]),
                               np.asarray(grad_surf_r), rtol=5e-2, atol=2e-2)

    print("KERNEL_OK")
</pallas_src>

<mosaic_0001>
module attributes {stable_mosaic.version = 11 : i64} {
  func.func @_encoder_kernel(%arg0: i32, %arg1: memref<1x64x3xf32, #tpu.memory_space<vmem>>, %arg2: memref<3x128xbf16, #tpu.memory_space<vmem>>, %arg3: memref<1x128xf32, #tpu.memory_space<vmem>>, %arg4: memref<128x64xbf16, #tpu.memory_space<vmem>>, %arg5: memref<1x64xf32, #tpu.memory_space<vmem>>, %arg6: memref<128x64xbf16, #tpu.memory_space<vmem>>, %arg7: memref<1x64xf32, #tpu.memory_space<vmem>>, %arg8: memref<128x64xbf16, #tpu.memory_space<vmem>>, %arg9: memref<1x64xf32, #tpu.memory_space<vmem>>, %arg10: memref<128x64xbf16, #tpu.memory_space<vmem>>, %arg11: memref<1x64xf32, #tpu.memory_space<vmem>>, %arg12: memref<64x32xbf16, #tpu.memory_space<vmem>>, %arg13: memref<1x32xf32, #tpu.memory_space<vmem>>, %arg14: memref<64x32xbf16, #tpu.memory_space<vmem>>, %arg15: memref<1x32xf32, #tpu.memory_space<vmem>>, %arg16: memref<1x1x32xf32, #tpu.memory_space<vmem>>, %arg17: memref<1x1x32xf32, #tpu.memory_space<vmem>>) attributes {dimension_semantics = [#tpu.dimension_semantics<parallel>], iteration_bounds = array<i64: 2>, scalar_prefetch = 0 : i64, scratch_operands = 0 : i64, tpu.core_type = #tpu.core_type<tc>, window_params = [{transform_indices = @transform_0, window_bounds = array<i64: 1, 64, 3>}, {pipeline_mode = #tpu.pipeline_mode<synchronous>, transform_indices = @transform_1, window_bounds = array<i64: 3, 128>}, {pipeline_mode = #tpu.pipeline_mode<synchronous>, transform_indices = @transform_2, window_bounds = array<i64: 1, 128>}, {pipeline_mode = #tpu.pipeline_mode<synchronous>, transform_indices = @transform_3, window_bounds = array<i64: 128, 64>}, {pipeline_mode = #tpu.pipeline_mode<synchronous>, transform_indices = @transform_4, window_bounds = array<i64: 1, 64>}, {pipeline_mode = #tpu.pipeline_mode<synchronous>, transform_indices = @transform_5, window_bounds = array<i64: 128, 64>}, {pipeline_mode = #tpu.pipeline_mode<synchronous>, transform_indices = @transform_6, window_bounds = array<i64: 1, 64>}, {pipeline_mode = #tpu.pipeline_mode<synchronous>, transform_indices = @transform_7, window_bounds = array<i64: 128, 64>}, {pipeline_mode = #tpu.pipeline_mode<synchronous>, transform_indices = @transform_8, window_bounds = array<i64: 1, 64>}, {pipeline_mode = #tpu.pipeline_mode<synchronous>, transform_indices = @transform_9, window_bounds = array<i64: 128, 64>}, {pipeline_mode = #tpu.pipeline_mode<synchronous>, transform_indices = @transform_10, window_bounds = array<i64: 1, 64>}, {pipeline_mode = #tpu.pipeline_mode<synchronous>, transform_indices = @transform_11, window_bounds = array<i64: 64, 32>}, {pipeline_mode = #tpu.pipeline_mode<synchronous>, transform_indices = @transform_12, window_bounds = array<i64: 1, 32>}, {pipeline_mode = #tpu.pipeline_mode<synchronous>, transform_indices = @transform_13, window_bounds = array<i64: 64, 32>}, {pipeline_mode = #tpu.pipeline_mode<synchronous>, transform_indices = @transform_14, window_bounds = array<i64: 1, 32>}, {transform_indices = @transform_15, window_bounds = array<i64: 1, 1, 32>}, {transform_indices = @transform_16, window_bounds = array<i64: 1, 1, 32>}]} {
    %c0 = arith.constant 0 : index
    %c0_0 = arith.constant 0 : index
    %c0_1 = arith.constant 0 : index
    %0 = vector.load %arg1[%c0, %c0_0, %c0_1] : memref<1x64x3xf32, #tpu.memory_space<vmem>>, vector<1x64x3xf32>
    %1 = vector.shape_cast %0 : vector<1x64x3xf32> to vector<64x3xf32>
    %2 = arith.truncf %1 : vector<64x3xf32> to vector<64x3xbf16>
    %c0_2 = arith.constant 0 : index
    %c0_3 = arith.constant 0 : index
    %3 = vector.load %arg2[%c0_2, %c0_3] : memref<3x128xbf16, #tpu.memory_space<vmem>>, vector<3x128xbf16>
    %cst = arith.constant dense<0.000000e+00> : vector<64x128xf32>
    %4 = tpu.matmul %2, %3, %cst {dimension_numbers = #tpu.dot_dimension_numbers<[1], [0], [0], [1], [0, 0, 1, 1], [], []>} : vector<64x3xbf16>, vector<3x128xbf16>, vector<64x128xf32> -> vector<64x128xf32>
    %c0_4 = arith.constant 0 : index
    %c0_5 = arith.constant 0 : index
    %5 = vector.load %arg3[%c0_4, %c0_5] : memref<1x128xf32, #tpu.memory_space<vmem>>, vector<1x128xf32>
    %6 = vector.broadcast %5 : vector<1x128xf32> to vector<64x128xf32>
    %7 = arith.addf %4, %6 : vector<64x128xf32>
    %cst_6 = arith.constant 0.000000e+00 : f32
    %8 = vector.broadcast %cst_6 : f32 to vector<64x128xf32>
    %9 = arith.maximumf %7, %8 : vector<64x128xf32>
    %10 = arith.truncf %9 : vector<64x128xf32> to vector<64x128xbf16>
    %c0_7 = arith.constant 0 : index
    %c0_8 = arith.constant 0 : index
    %11 = vector.load %arg4[%c0_7, %c0_8] : memref<128x64xbf16, #tpu.memory_space<vmem>>, vector<128x64xbf16>
    %cst_9 = arith.constant dense<0.000000e+00> : vector<64x64xf32>
    %12 = tpu.matmul %10, %11, %cst_9 {dimension_numbers = #tpu.dot_dimension_numbers<[1], [0], [0], [1], [0, 0, 1, 1], [], []>} : vector<64x128xbf16>, vector<128x64xbf16>, vector<64x64xf32> -> vector<64x64xf32>
    %c0_10 = arith.constant 0 : index
    %c0_11 = arith.constant 0 : index
    %13 = vector.load %arg5[%c0_10, %c0_11] : memref<1x64xf32, #tpu.memory_space<vmem>>, vector<1x64xf32>
    %14 = vector.broadcast %13 : vector<1x64xf32> to vector<64x64xf32>
    %15 = arith.addf %12, %14 : vector<64x64xf32>
    %cst_12 = arith.constant 0.000000e+00 : f32
    %16 = vector.broadcast %cst_12 : f32 to vector<64x64xf32>
    %17 = arith.maximumf %15, %16 : vector<64x64xf32>
    %cst_13 = arith.constant dense<0xFF800000> : vector<64xf32>
    %18 = vector.multi_reduction <maximumf>, %17, %cst_13 [0] : vector<64x64xf32> to vector<64xf32>
    %19 = vector.shape_cast %18 : vector<64xf32> to vector<1x64xf32>
    %c0_14 = arith.constant 0 : index
    %c0_15 = arith.constant 0 : index
    %20 = vector.load %arg6[%c0_14, %c0_15] : memref<128x64xbf16, #tpu.memory_space<vmem>>, vector<128x64xbf16>
    %21 = arith.truncf %17 : vector<64x64xf32> to vector<64x64xbf16>
    %22 = vector.extract_strided_slice %20 {offsets = [0, 0], sizes = [64, 64], strides = [1, 1]} : vector<128x64xbf16> to vector<64x64xbf16>
    %cst_16 = arith.constant dense<0.000000e+00> : vector<64x64xf32>
    %23 = tpu.matmul %21, %22, %cst_16 {dimension_numbers = #tpu.dot_dimension_numbers<[1], [0], [0], [1], [0, 0, 1, 1], [], []>} : vector<64x64xbf16>, vector<64x64xbf16>, vector<64x64xf32> -> vector<64x64xf32>
    %24 = arith.truncf %19 : vector<1x64xf32> to vector<1x64xbf16>
    %25 = vector.extract_strided_slice %20 {offsets = [64, 0], sizes = [64, 64], strides = [1, 1]} : vector<128x64xbf16> to vector<64x64xbf16>
    %cst_17 = arith.constant dense<0.000000e+00> : vector<1x64xf32>
    %26 = tpu.matmul %24, %25, %cst_17 {dimension_numbers = #tpu.dot_dimension_numbers<[1], [0], [0], [1], [0, 0, 1, 1], [], []>} : vector<1x64xbf16>, vector<64x64xbf16>, vector<1x64xf32> -> vector<1x64xf32>
    %27 = vector.broadcast %26 : vector<1x64xf32> to vector<64x64xf32>
    %28 = arith.addf %23, %27 : vector<64x64xf32>
    %c0_18 = arith.constant 0 : index
    %c0_19 = arith.constant 0 : index
    %29 = vector.load %arg7[%c0_18, %c0_19] : memref<1x64xf32, #tpu.memory_space<vmem>>, vector<1x64xf32>
    %30 = vector.broadcast %29 : vector<1x64xf32> to vector<64x64xf32>
    %31 = arith.addf %28, %30 : vector<64x64xf32>
    %cst_20 = arith.constant 0.000000e+00 : f32
    %32 = vector.broadcast %cst_20 : f32 to vector<64x64xf32>
    %33 = arith.maximumf %31, %32 : vector<64x64xf32>
    %cst_21 = arith.constant dense<0xFF800000> : vector<64xf32>
    %34 = vector.multi_reduction <maximumf>, %33, %cst_21 [0] : vector<64x64xf32> to vector<64xf32>
    %35 = vector.shape_cast %34 : vector<64xf32> to vector<1x64xf32>
    %c0_22 = arith.constant 0 : index
    %c0_23 = arith.constant 0 : index
    %36 = vector.load %arg8[%c0_22, %c0_23] : memref<128x64xbf16, #tpu.memory_space<vmem>>, vector<128x64xbf16>
    %37 = arith.truncf %33 : vector<64x64xf32> to vector<64x64xbf16>
    %38 = vector.extract_strided_slice %36 {offsets = [0, 0], sizes = [64, 64], strides = [1, 1]} : vector<128x64xbf16> to vector<64x64xbf16>
    %cst_24 = arith.constant dense<0.000000e+00> : vector<64x64xf32>
    %39 = tpu.matmul %37, %38, %cst_24 {dimension_numbers = #tpu.dot_dimension_numbers<[1], [0], [0], [1], [0, 0, 1, 1], [], []>} : vector<64x64xbf16>, vector<64x64xbf16>, vector<64x64xf32> -> vector<64x64xf32>
    %40 = arith.truncf %35 : vector<1x64xf32> to vector<1x64xbf16>
    %41 = vector.extract_strided_slice %36 {offsets = [64, 0], sizes = [64, 64], strides = [1, 1]} : vector<128x64xbf16> to vector<64x64xbf16>
    %cst_25 = arith.constant dense<0.000000e+00> : vector<1x64xf32>
    %42 = tpu.matmul %40, %41, %cst_25 {dimension_numbers = #tpu.dot_dimension_numbers<[1], [0], [0], [1], [0, 0, 1, 1], [], []>} : vector<1x64xbf16>, vector<64x64xbf16>, vector<1x64xf32> -> vector<1x64xf32>
    %43 = vector.broadcast %42 : vector<1x64xf32> to vector<64x64xf32>
    %44 = arith.addf %39, %43 : vector<64x64xf32>
    %c0_26 = arith.constant 0 : index
    %c0_27 = arith.constant 0 : index
    %45 = vector.load %arg9[%c0_26, %c0_27] : memref<1x64xf32, #tpu.memory_space<vmem>>, vector<1x64xf32>
    %46 = vector.broadcast %45 : vector<1x64xf32> to vector<64x64xf32>
    %47 = arith.addf %44, %46 : vector<64x64xf32>
    %cst_28 = arith.constant 0.000000e+00 : f32
    %48 = vector.broadcast %cst_28 : f32 to vector<64x64xf32>
    %49 = arith.maximumf %47, %48 : vector<64x64xf32>
    %cst_29 = arith.constant dense<0xFF800000> : vector<64xf32>
    %50 = vector.multi_reduction <maximumf>, %49, %cst_29 [0] : vector<64x64xf32> to vector<64xf32>
    %51 = vector.shape_cast %50 : vector<64xf32> to vector<1x64xf32>
    %c0_30 = arith.constant 0 : index
    %c0_31 = arith.constant 0 : index
    %52 = vector.load %arg10[%c0_30, %c0_31] : memref<128x64xbf16, #tpu.memory_space<vmem>>, vector<128x64xbf16>
    %53 = arith.truncf %49 : vector<64x64xf32> to vector<64x64xbf16>
    %54 = vector.extract_strided_slice %52 {offsets = [0, 0], sizes = [64, 64], strides = [1, 1]} : vector<128x64xbf16> to vector<64x64xbf16>
    %cst_32 = arith.constant dense<0.000000e+00> : vector<64x64xf32>
    %55 = tpu.matmul %53, %54, %cst_32 {dimension_numbers = #tpu.dot_dimension_numbers<[1], [0], [0], [1], [0, 0, 1, 1], [], []>} : vector<64x64xbf16>, vector<64x64xbf16>, vector<64x64xf32> -> vector<64x64xf32>
    %56 = arith.truncf %51 : vector<1x64xf32> to vector<1x64xbf16>
    %57 = vector.extract_strided_slice %52 {offsets = [64, 0], sizes = [64, 64], strides = [1, 1]} : vector<128x64xbf16> to vector<64x64xbf16>
    %cst_33 = arith.constant dense<0.000000e+00> : vector<1x64xf32>
    %58 = tpu.matmul %56, %57, %cst_33 {dimension_numbers = #tpu.dot_dimension_numbers<[1], [0], [0], [1], [0, 0, 1, 1], [], []>} : vector<1x64xbf16>, vector<64x64xbf16>, vector<1x64xf32> -> vector<1x64xf32>
    %59 = vector.broadcast %58 : vector<1x64xf32> to vector<64x64xf32>
    %60 = arith.addf %55, %59 : vector<64x64xf32>
    %c0_34 = arith.constant 0 : index
    %c0_35 = arith.constant 0 : index
    %61 = vector.load %arg11[%c0_34, %c0_35] : memref<1x64xf32, #tpu.memory_space<vmem>>, vector<1x64xf32>
    %62 = vector.broadcast %61 : vector<1x64xf32> to vector<64x64xf32>
    %63 = arith.addf %60, %62 : vector<64x64xf32>
    %cst_36 = arith.constant dense<0xFF800000> : vector<64xf32>
    %64 = vector.multi_reduction <maximumf>, %63, %cst_36 [0] : vector<64x64xf32> to vector<64xf32>
    %65 = vector.shape_cast %64 : vector<64xf32> to vector<1x64xf32>
    %cst_37 = arith.constant 0.000000e+00 : f32
    %66 = vector.broadcast %cst_37 : f32 to vector<1x64xf32>
    %67 = arith.maximumf %65, %66 : vector<1x64xf32>
    %68 = arith.truncf %67 : vector<1x64xf32> to vector<1x64xbf16>
    %c0_38 = arith.constant 0 : index
    %c0_39 = arith.constant 0 : index
    %69 = vector.load %arg12[%c0_38, %c0_39] : memref<64x32xbf16, #tpu.memory_space<vmem>>, vector<64x32xbf16>
    %cst_40 = arith.constant dense<0.000000e+00> : vector<1x32xf32>
    %70 = tpu.matmul %68, %69, %cst_40 {dimension_numbers = #tpu.dot_dimension_numbers<[1], [0], [0], [1], [0, 0, 1, 1], [], []>} : vector<1x64xbf16>, vector<64x32xbf16>, vector<1x32xf32> -> vector<1x32xf32>
    %c0_41 = arith.constant 0 : index
    %c0_42 = arith.constant 0 : index
    %71 = vector.load %arg13[%c0_41, %c0_42] : memref<1x32xf32, #tpu.memory_space<vmem>>, vector<1x32xf32>
    %72 = arith.addf %70, %71 : vector<1x32xf32>
    %c0_43 = arith.constant 0 : index
    %c0_44 = arith.constant 0 : index
    %c0_45 = arith.constant 0 : index
    %73 = vector.load %arg16[%c0_43, %c0_44, %c0_45] : memref<1x1x32xf32, #tpu.memory_space<vmem>>, vector<1x1x32xf32>
    %74 = vector.shape_cast %73 : vector<1x1x32xf32> to vector<1x32xf32>
    %75 = vector.shape_cast %72 : vector<1x32xf32> to vector<1x1x32xf32>
    tpu.vector_store %arg16[%c0_43, %c0_44, %c0_45], %75 {strides = array<i32>} : memref<1x1x32xf32, #tpu.memory_space<vmem>>, vector<1x1x32xf32>,
    %76 = arith.truncf %67 : vector<1x64xf32> to vector<1x64xbf16>
    %c0_46 = arith.constant 0 : index
    %c0_47 = arith.constant 0 : index
    %77 = vector.load %arg14[%c0_46, %c0_47] : memref<64x32xbf16, #tpu.memory_space<vmem>>, vector<64x32xbf16>
    %cst_48 = arith.constant dense<0.000000e+00> : vector<1x32xf32>
    %78 = tpu.matmul %76, %77, %cst_48 {dimension_numbers = #tpu.dot_dimension_numbers<[1], [0], [0], [1], [0, 0, 1, 1], [], []>} : vector<1x64xbf16>, vector<64x32xbf16>, vector<1x32xf32> -> vector<1x32xf32>
    %c0_49 = arith.constant 0 : index
    %c0_50 = arith.constant 0 : index
    %79 = vector.load %arg15[%c0_49, %c0_50] : memref<1x32xf32, #tpu.memory_space<vmem>>, vector<1x32xf32>
    %80 = arith.addf %78, %79 : vector<1x32xf32>
    %c0_51 = arith.constant 0 : index
    %c0_52 = arith.constant 0 : index
    %c0_53 = arith.constant 0 : index
    %81 = vector.load %arg17[%c0_51, %c0_52, %c0_53] : memref<1x1x32xf32, #tpu.memory_space<vmem>>, vector<1x1x32xf32>
    %82 = vector.shape_cast %81 : vector<1x1x32xf32> to vector<1x32xf32>
    %83 = vector.shape_cast %80 : vector<1x32xf32> to vector<1x1x32xf32>
    tpu.vector_store %arg17[%c0_51, %c0_52, %c0_53], %83 {strides = array<i32>} : memref<1x1x32xf32, #tpu.memory_space<vmem>>, vector<1x1x32xf32>,
    return
  }
  func.func @transform_0(%arg0: i32) -> (i32, i32, i32) {
    %c0_i32 = arith.constant 0 : i32
    %c0_i32_0 = arith.constant 0 : i32
    %c0_i32_1 = arith.constant 0 : i32
    return %arg0, %c0_i32, %c0_i32_0 : i32, i32, i32
  }
  func.func @transform_1(%arg0: i32) -> (i32, i32) {
    %c0_i32 = arith.constant 0 : i32
    %c0_i32_0 = arith.constant 0 : i32
    %c0_i32_1 = arith.constant 0 : i32
    return %c0_i32, %c0_i32_0 : i32, i32
  }
  func.func @transform_2(%arg0: i32) -> (i32, i32) {
    %c0_i32 = arith.constant 0 : i32
    %c0_i32_0 = arith.constant 0 : i32
    %c0_i32_1 = arith.constant 0 : i32
    return %c0_i32, %c0_i32_0 : i32, i32
  }
  func.func @transform_3(%arg0: i32) -> (i32, i32) {
    %c0_i32 = arith.constant 0 : i32
    %c0_i32_0 = arith.constant 0 : i32
    %c0_i32_1 = arith.constant 0 : i32
    return %c0_i32, %c0_i32_0 : i32, i32
  }
  func.func @transform_4(%arg0: i32) -> (i32, i32) {
    %c0_i32 = arith.constant 0 : i32
    %c0_i32_0 = arith.constant 0 : i32
    %c0_i32_1 = arith.constant 0 : i32
    return %c0_i32, %c0_i32_0 : i32, i32
  }
  func.func @transform_5(%arg0: i32) -> (i32, i32) {
    %c0_i32 = arith.constant 0 : i32
    %c0_i32_0 = arith.constant 0 : i32
    %c0_i32_1 = arith.constant 0 : i32
    return %c0_i32, %c0_i32_0 : i32, i32
  }
  func.func @transform_6(%arg0: i32) -> (i32, i32) {
    %c0_i32 = arith.constant 0 : i32
    %c0_i32_0 = arith.constant 0 : i32
    %c0_i32_1 = arith.constant 0 : i32
    return %c0_i32, %c0_i32_0 : i32, i32
  }
  func.func @transform_7(%arg0: i32) -> (i32, i32) {
    %c0_i32 = arith.constant 0 : i32
    %c0_i32_0 = arith.constant 0 : i32
    %c0_i32_1 = arith.constant 0 : i32
    return %c0_i32, %c0_i32_0 : i32, i32
  }
  func.func @transform_8(%arg0: i32) -> (i32, i32) {
    %c0_i32 = arith.constant 0 : i32
    %c0_i32_0 = arith.constant 0 : i32
    %c0_i32_1 = arith.constant 0 : i32
    return %c0_i32, %c0_i32_0 : i32, i32
  }
  func.func @transform_9(%arg0: i32) -> (i32, i32) {
    %c0_i32 = arith.constant 0 : i32
    %c0_i32_0 = arith.constant 0 : i32
    %c0_i32_1 = arith.constant 0 : i32
    return %c0_i32, %c0_i32_0 : i32, i32
  }
  func.func @transform_10(%arg0: i32) -> (i32, i32) {
    %c0_i32 = arith.constant 0 : i32
    %c0_i32_0 = arith.constant 0 : i32
    %c0_i32_1 = arith.constant 0 : i32
    return %c0_i32, %c0_i32_0 : i32, i32
  }
  func.func @transform_11(%arg0: i32) -> (i32, i32) {
    %c0_i32 = arith.constant 0 : i32
    %c0_i32_0 = arith.constant 0 : i32
    %c0_i32_1 = arith.constant 0 : i32
    return %c0_i32, %c0_i32_0 : i32, i32
  }
  func.func @transform_12(%arg0: i32) -> (i32, i32) {
    %c0_i32 = arith.constant 0 : i32
    %c0_i32_0 = arith.constant 0 : i32
    %c0_i32_1 = arith.constant 0 : i32
    return %c0_i32, %c0_i32_0 : i32, i32
  }
  func.func @transform_13(%arg0: i32) -> (i32, i32) {
    %c0_i32 = arith.constant 0 : i32
    %c0_i32_0 = arith.constant 0 : i32
    %c0_i32_1 = arith.constant 0 : i32
    return %c0_i32, %c0_i32_0 : i32, i32
  }
  func.func @transform_14(%arg0: i32) -> (i32, i32) {
    %c0_i32 = arith.constant 0 : i32
    %c0_i32_0 = arith.constant 0 : i32
    %c0_i32_1 = arith.constant 0 : i32
    return %c0_i32, %c0_i32_0 : i32, i32
  }
  func.func @transform_15(%arg0: i32) -> (i32, i32, i32) {
    %c0_i32 = arith.constant 0 : i32
    %c0_i32_0 = arith.constant 0 : i32
    %c0_i32_1 = arith.constant 0 : i32
    return %arg0, %c0_i32, %c0_i32_0 : i32, i32, i32
  }
  func.func @transform_16(%arg0: i32) -> (i32, i32, i32) {
    %c0_i32 = arith.constant 0 : i32
    %c0_i32_0 = arith.constant 0 : i32
    %c0_i32_1 = arith.constant 0 : i32
    return %arg0, %c0_i32, %c0_i32_0 : i32, i32, i32
  }
}

module attributes {stable_mosaic.version = 11 : i64} {
  func.func @_encoder_kernel(%arg0: i32, %arg1: memref<1x64x3xf32, #tpu.memory_space<vmem>>, %arg2: memref<3x128xbf16, #tpu.memory_space<vmem>>, %arg3: memref<1x128xf32, #tpu.memory_space<vmem>>, %arg4: memref<128x64xbf16, #tpu.memory_space<vmem>>, %arg5: memref<1x64xf32, #tpu.memory_space<vmem>>, %arg6: memref<128x64xbf16, #tpu.memory_space<vmem>>, %arg7: memref<1x64xf32, #tpu.memory_space<vmem>>, %arg8: memref<128x64xbf16, #tpu.memory_space<vmem>>, %arg9: memref<1x64xf32, #tpu.memory_space<vmem>>, %arg10: memref<128x64xbf16, #tpu.memory_space<vmem>>, %arg11: memref<1x64xf32, #tpu.memory_space<vmem>>, %arg12: memref<64x32xbf16, #tpu.memory_space<vmem>>, %arg13: memref<1x32xf32, #tpu.memory_space<vmem>>, %arg14: memref<64x32xbf16, #tpu.memory_space<vmem>>, %arg15: memref<1x32xf32, #tpu.memory_space<vmem>>, %arg16: memref<1x1x32xf32, #tpu.memory_space<vmem>>, %arg17: memref<1x1x32xf32, #tpu.memory_space<vmem>>) attributes {dimension_semantics = [#tpu.dimension_semantics<parallel>], iteration_bounds = array<i64: 2>, scalar_prefetch = 0 : i64, scratch_operands = 0 : i64, tpu.core_type = #tpu.core_type<tc>, window_params = [{transform_indices = @transform_0, window_bounds = array<i64: 1, 64, 3>}, {pipeline_mode = #tpu.pipeline_mode<synchronous>, transform_indices = @transform_1, window_bounds = array<i64: 3, 128>}, {pipeline_mode = #tpu.pipeline_mode<synchronous>, transform_indices = @transform_2, window_bounds = array<i64: 1, 128>}, {pipeline_mode = #tpu.pipeline_mode<synchronous>, transform_indices = @transform_3, window_bounds = array<i64: 128, 64>}, {pipeline_mode = #tpu.pipeline_mode<synchronous>, transform_indices = @transform_4, window_bounds = array<i64: 1, 64>}, {pipeline_mode = #tpu.pipeline_mode<synchronous>, transform_indices = @transform_5, window_bounds = array<i64: 128, 64>}, {pipeline_mode = #tpu.pipeline_mode<synchronous>, transform_indices = @transform_6, window_bounds = array<i64: 1, 64>}, {pipeline_mode = #tpu.pipeline_mode<synchronous>, transform_indices = @transform_7, window_bounds = array<i64: 128, 64>}, {pipeline_mode = #tpu.pipeline_mode<synchronous>, transform_indices = @transform_8, window_bounds = array<i64: 1, 64>}, {pipeline_mode = #tpu.pipeline_mode<synchronous>, transform_indices = @transform_9, window_bounds = array<i64: 128, 64>}, {pipeline_mode = #tpu.pipeline_mode<synchronous>, transform_indices = @transform_10, window_bounds = array<i64: 1, 64>}, {pipeline_mode = #tpu.pipeline_mode<synchronous>, transform_indices = @transform_11, window_bounds = array<i64: 64, 32>}, {pipeline_mode = #tpu.pipeline_mode<synchronous>, transform_indices = @transform_12, window_bounds = array<i64: 1, 32>}, {pipeline_mode = #tpu.pipeline_mode<synchronous>, transform_indices = @transform_13, window_bounds = array<i64: 64, 32>}, {pipeline_mode = #tpu.pipeline_mode<synchronous>, transform_indices = @transform_14, window_bounds = array<i64: 1, 32>}, {transform_indices = @transform_15, window_bounds = array<i64: 1, 1, 32>}, {transform_indices = @transform_16, window_bounds = array<i64: 1, 1, 32>}]} {
    %c0 = arith.constant 0 : index
    %c0_0 = arith.constant 0 : index
    %c0_1 = arith.constant 0 : index
    %0 = vector.load %arg1[%c0, %c0_0, %c0_1] : memref<1x64x3xf32, #tpu.memory_space<vmem>>, vector<1x64x3xf32>
    %1 = vector.shape_cast %0 : vector<1x64x3xf32> to vector<64x3xf32>
    %2 = arith.truncf %1 : vector<64x3xf32> to vector<64x3xbf16>
    %c0_2 = arith.constant 0 : index
    %c0_3 = arith.constant 0 : index
    %3 = vector.load %arg2[%c0_2, %c0_3] : memref<3x128xbf16, #tpu.memory_space<vmem>>, vector<3x128xbf16>
    %cst = arith.constant dense<0.000000e+00> : vector<64x128xf32>
    %4 = tpu.matmul %2, %3, %cst {dimension_numbers = #tpu.dot_dimension_numbers<[1], [0], [0], [1], [0, 0, 1, 1], [], []>} : vector<64x3xbf16>, vector<3x128xbf16>, vector<64x128xf32> -> vector<64x128xf32>
    %c0_4 = arith.constant 0 : index
    %c0_5 = arith.constant 0 : index
    %5 = vector.load %arg3[%c0_4, %c0_5] : memref<1x128xf32, #tpu.memory_space<vmem>>, vector<1x128xf32>
    %6 = vector.broadcast %5 : vector<1x128xf32> to vector<64x128xf32>
    %7 = arith.addf %4, %6 : vector<64x128xf32>
    %cst_6 = arith.constant 0.000000e+00 : f32
    %8 = vector.broadcast %cst_6 : f32 to vector<64x128xf32>
    %9 = arith.maximumf %7, %8 : vector<64x128xf32>
    %10 = arith.truncf %9 : vector<64x128xf32> to vector<64x128xbf16>
    %c0_7 = arith.constant 0 : index
    %c0_8 = arith.constant 0 : index
    %11 = vector.load %arg4[%c0_7, %c0_8] : memref<128x64xbf16, #tpu.memory_space<vmem>>, vector<128x64xbf16>
    %cst_9 = arith.constant dense<0.000000e+00> : vector<64x64xf32>
    %12 = tpu.matmul %10, %11, %cst_9 {dimension_numbers = #tpu.dot_dimension_numbers<[1], [0], [0], [1], [0, 0, 1, 1], [], []>} : vector<64x128xbf16>, vector<128x64xbf16>, vector<64x64xf32> -> vector<64x64xf32>
    %c0_10 = arith.constant 0 : index
    %c0_11 = arith.constant 0 : index
    %13 = vector.load %arg5[%c0_10, %c0_11] : memref<1x64xf32, #tpu.memory_space<vmem>>, vector<1x64xf32>
    %14 = vector.broadcast %13 : vector<1x64xf32> to vector<64x64xf32>
    %15 = arith.addf %12, %14 : vector<64x64xf32>
    %cst_12 = arith.constant 0.000000e+00 : f32
    %16 = vector.broadcast %cst_12 : f32 to vector<64x64xf32>
    %17 = arith.maximumf %15, %16 : vector<64x64xf32>
    %cst_13 = arith.constant dense<0xFF800000> : vector<64xf32>
    %18 = vector.multi_reduction <maximumf>, %17, %cst_13 [0] : vector<64x64xf32> to vector<64xf32>
    %19 = vector.shape_cast %18 : vector<64xf32> to vector<1x64xf32>
    %c0_14 = arith.constant 0 : index
    %c0_15 = arith.constant 0 : index
    %20 = vector.load %arg6[%c0_14, %c0_15] : memref<128x64xbf16, #tpu.memory_space<vmem>>, vector<128x64xbf16>
    %21 = arith.truncf %17 : vector<64x64xf32> to vector<64x64xbf16>
    %22 = vector.extract_strided_slice %20 {offsets = [0, 0], sizes = [64, 64], strides = [1, 1]} : vector<128x64xbf16> to vector<64x64xbf16>
    %cst_16 = arith.constant dense<0.000000e+00> : vector<64x64xf32>
    %23 = tpu.matmul %21, %22, %cst_16 {dimension_numbers = #tpu.dot_dimension_numbers<[1], [0], [0], [1], [0, 0, 1, 1], [], []>} : vector<64x64xbf16>, vector<64x64xbf16>, vector<64x64xf32> -> vector<64x64xf32>
    %24 = arith.truncf %19 : vector<1x64xf32> to vector<1x64xbf16>
    %25 = vector.extract_strided_slice %20 {offsets = [64, 0], sizes = [64, 64], strides = [1, 1]} : vector<128x64xbf16> to vector<64x64xbf16>
    %cst_17 = arith.constant dense<0.000000e+00> : vector<1x64xf32>
    %26 = tpu.matmul %24, %25, %cst_17 {dimension_numbers = #tpu.dot_dimension_numbers<[1], [0], [0], [1], [0, 0, 1, 1], [], []>} : vector<1x64xbf16>, vector<64x64xbf16>, vector<1x64xf32> -> vector<1x64xf32>
    %27 = vector.broadcast %26 : vector<1x64xf32> to vector<64x64xf32>
    %28 = arith.addf %23, %27 : vector<64x64xf32>
    %c0_18 = arith.constant 0 : index
    %c0_19 = arith.constant 0 : index
    %29 = vector.load %arg7[%c0_18, %c0_19] : memref<1x64xf32, #tpu.memory_space<vmem>>, vector<1x64xf32>
    %30 = vector.broadcast %29 : vector<1x64xf32> to vector<64x64xf32>
    %31 = arith.addf %28, %30 : vector<64x64xf32>
    %cst_20 = arith.constant 0.000000e+00 : f32
    %32 = vector.broadcast %cst_20 : f32 to vector<64x64xf32>
    %33 = arith.maximumf %31, %32 : vector<64x64xf32>
    %cst_21 = arith.constant dense<0xFF800000> : vector<64xf32>
    %34 = vector.multi_reduction <maximumf>, %33, %cst_21 [0] : vector<64x64xf32> to vector<64xf32>
    %35 = vector.shape_cast %34 : vector<64xf32> to vector<1x64xf32>
    %c0_22 = arith.constant 0 : index
    %c0_23 = arith.constant 0 : index
    %36 = vector.load %arg8[%c0_22, %c0_23] : memref<128x64xbf16, #tpu.memory_space<vmem>>, vector<128x64xbf16>
    %37 = arith.truncf %33 : vector<64x64xf32> to vector<64x64xbf16>
    %38 = vector.extract_strided_slice %36 {offsets = [0, 0], sizes = [64, 64], strides = [1, 1]} : vector<128x64xbf16> to vector<64x64xbf16>
    %cst_24 = arith.constant dense<0.000000e+00> : vector<64x64xf32>
    %39 = tpu.matmul %37, %38, %cst_24 {dimension_numbers = #tpu.dot_dimension_numbers<[1], [0], [0], [1], [0, 0, 1, 1], [], []>} : vector<64x64xbf16>, vector<64x64xbf16>, vector<64x64xf32> -> vector<64x64xf32>
    %40 = arith.truncf %35 : vector<1x64xf32> to vector<1x64xbf16>
    %41 = vector.extract_strided_slice %36 {offsets = [64, 0], sizes = [64, 64], strides = [1, 1]} : vector<128x64xbf16> to vector<64x64xbf16>
    %cst_25 = arith.constant dense<0.000000e+00> : vector<1x64xf32>
    %42 = tpu.matmul %40, %41, %cst_25 {dimension_numbers = #tpu.dot_dimension_numbers<[1], [0], [0], [1], [0, 0, 1, 1], [], []>} : vector<1x64xbf16>, vector<64x64xbf16>, vector<1x64xf32> -> vector<1x64xf32>
    %43 = vector.broadcast %42 : vector<1x64xf32> to vector<64x64xf32>
    %44 = arith.addf %39, %43 : vector<64x64xf32>
    %c0_26 = arith.constant 0 : index
    %c0_27 = arith.constant 0 : index
    %45 = vector.load %arg9[%c0_26, %c0_27] : memref<1x64xf32, #tpu.memory_space<vmem>>, vector<1x64xf32>
    %46 = vector.broadcast %45 : vector<1x64xf32> to vector<64x64xf32>
    %47 = arith.addf %44, %46 : vector<64x64xf32>
    %cst_28 = arith.constant 0.000000e+00 : f32
    %48 = vector.broadcast %cst_28 : f32 to vector<64x64xf32>
    %49 = arith.maximumf %47, %48 : vector<64x64xf32>
    %cst_29 = arith.constant dense<0xFF800000> : vector<64xf32>
    %50 = vector.multi_reduction <maximumf>, %49, %cst_29 [0] : vector<64x64xf32> to vector<64xf32>
    %51 = vector.shape_cast %50 : vector<64xf32> to vector<1x64xf32>
    %c0_30 = arith.constant 0 : index
    %c0_31 = arith.constant 0 : index
    %52 = vector.load %arg10[%c0_30, %c0_31] : memref<128x64xbf16, #tpu.memory_space<vmem>>, vector<128x64xbf16>
    %53 = arith.truncf %49 : vector<64x64xf32> to vector<64x64xbf16>
    %54 = vector.extract_strided_slice %52 {offsets = [0, 0], sizes = [64, 64], strides = [1, 1]} : vector<128x64xbf16> to vector<64x64xbf16>
    %cst_32 = arith.constant dense<0.000000e+00> : vector<64x64xf32>
    %55 = tpu.matmul %53, %54, %cst_32 {dimension_numbers = #tpu.dot_dimension_numbers<[1], [0], [0], [1], [0, 0, 1, 1], [], []>} : vector<64x64xbf16>, vector<64x64xbf16>, vector<64x64xf32> -> vector<64x64xf32>
    %56 = arith.truncf %51 : vector<1x64xf32> to vector<1x64xbf16>
    %57 = vector.extract_strided_slice %52 {offsets = [64, 0], sizes = [64, 64], strides = [1, 1]} : vector<128x64xbf16> to vector<64x64xbf16>
    %cst_33 = arith.constant dense<0.000000e+00> : vector<1x64xf32>
    %58 = tpu.matmul %56, %57, %cst_33 {dimension_numbers = #tpu.dot_dimension_numbers<[1], [0], [0], [1], [0, 0, 1, 1], [], []>} : vector<1x64xbf16>, vector<64x64xbf16>, vector<1x64xf32> -> vector<1x64xf32>
    %59 = vector.broadcast %58 : vector<1x64xf32> to vector<64x64xf32>
    %60 = arith.addf %55, %59 : vector<64x64xf32>
    %c0_34 = arith.constant 0 : index
    %c0_35 = arith.constant 0 : index
    %61 = vector.load %arg11[%c0_34, %c0_35] : memref<1x64xf32, #tpu.memory_space<vmem>>, vector<1x64xf32>
    %62 = vector.broadcast %61 : vector<1x64xf32> to vector<64x64xf32>
    %63 = arith.addf %60, %62 : vector<64x64xf32>
    %cst_36 = arith.constant dense<0xFF800000> : vector<64xf32>
    %64 = vector.multi_reduction <maximumf>, %63, %cst_36 [0] : vector<64x64xf32> to vector<64xf32>
    %65 = vector.shape_cast %64 : vector<64xf32> to vector<1x64xf32>
    %cst_37 = arith.constant 0.000000e+00 : f32
    %66 = vector.broadcast %cst_37 : f32 to vector<1x64xf32>
    %67 = arith.maximumf %65, %66 : vector<1x64xf32>
    %68 = arith.truncf %67 : vector<1x64xf32> to vector<1x64xbf16>
    %c0_38 = arith.constant 0 : index
    %c0_39 = arith.constant 0 : index
    %69 = vector.load %arg12[%c0_38, %c0_39] : memref<64x32xbf16, #tpu.memory_space<vmem>>, vector<64x32xbf16>
    %cst_40 = arith.constant dense<0.000000e+00> : vector<1x32xf32>
    %70 = tpu.matmul %68, %69, %cst_40 {dimension_numbers = #tpu.dot_dimension_numbers<[1], [0], [0], [1], [0, 0, 1, 1], [], []>} : vector<1x64xbf16>, vector<64x32xbf16>, vector<1x32xf32> -> vector<1x32xf32>
    %c0_41 = arith.constant 0 : index
    %c0_42 = arith.constant 0 : index
    %71 = vector.load %arg13[%c0_41, %c0_42] : memref<1x32xf32, #tpu.memory_space<vmem>>, vector<1x32xf32>
    %72 = arith.addf %70, %71 : vector<1x32xf32>
    %c0_43 = arith.constant 0 : index
    %c0_44 = arith.constant 0 : index
    %c0_45 = arith.constant 0 : index
    %73 = vector.load %arg16[%c0_43, %c0_44, %c0_45] : memref<1x1x32xf32, #tpu.memory_space<vmem>>, vector<1x1x32xf32>
    %74 = vector.shape_cast %73 : vector<1x1x32xf32> to vector<1x32xf32>
    %75 = vector.shape_cast %72 : vector<1x32xf32> to vector<1x1x32xf32>
    tpu.vector_store %arg16[%c0_43, %c0_44, %c0_45], %75 {strides = array<i32>} : memref<1x1x32xf32, #tpu.memory_space<vmem>>, vector<1x1x32xf32>,
    %76 = arith.truncf %67 : vector<1x64xf32> to vector<1x64xbf16>
    %c0_46 = arith.constant 0 : index
    %c0_47 = arith.constant 0 : index
    %77 = vector.load %arg14[%c0_46, %c0_47] : memref<64x32xbf16, #tpu.memory_space<vmem>>, vector<64x32xbf16>
    %cst_48 = arith.constant dense<0.000000e+00> : vector<1x32xf32>
    %78 = tpu.matmul %76, %77, %cst_48 {dimension_numbers = #tpu.dot_dimension_numbers<[1], [0], [0], [1], [0, 0, 1, 1], [], []>} : vector<1x64xbf16>, vector<64x32xbf16>, vector<1x32xf32> -> vector<1x32xf32>
    %c0_49 = arith.constant 0 : index
    %c0_50 = arith.constant 0 : index
    %79 = vector.load %arg15[%c0_49, %c0_50] : memref<1x32xf32, #tpu.memory_space<vmem>>, vector<1x32xf32>
    %80 = arith.addf %78, %79 : vector<1x32xf32>
    %c0_51 = arith.constant 0 : index
    %c0_52 = arith.constant 0 : index
    %c0_53 = arith.constant 0 : index
    %81 = vector.load %arg17[%c0_51, %c0_52, %c0_53] : memref<1x1x32xf32, #tpu.memory_space<vmem>>, vector<1x1x32xf32>
    %82 = vector.shape_cast %81 : vector<1x1x32xf32> to vector<1x32xf32>
    %83 = vector.shape_cast %80 : vector<1x32xf32> to vector<1x1x32xf32>
    tpu.vector_store %arg17[%c0_51, %c0_52, %c0_53], %83 {strides = array<i32>} : memref<1x1x32xf32, #tpu.memory_space<vmem>>, vector<1x1x32xf32>,
    return
  }
  func.func @transform_0(%arg0: i32) -> (i32, i32, i32) {
    %c0_i32 = arith.constant 0 : i32
    %c0_i32_0 = arith.constant 0 : i32
    %c0_i32_1 = arith.constant 0 : i32
    return %arg0, %c0_i32, %c0_i32_0 : i32, i32, i32
  }
  func.func @transform_1(%arg0: i32) -> (i32, i32) {
    %c0_i32 = arith.constant 0 : i32
    %c0_i32_0 = arith.constant 0 : i32
    %c0_i32_1 = arith.constant 0 : i32
    return %c0_i32, %c0_i32_0 : i32, i32
  }
  func.func @transform_2(%arg0: i32) -> (i32, i32) {
    %c0_i32 = arith.constant 0 : i32
    %c0_i32_0 = arith.constant 0 : i32
    %c0_i32_1 = arith.constant 0 : i32
    return %c0_i32, %c0_i32_0 : i32, i32
  }
  func.func @transform_3(%arg0: i32) -> (i32, i32) {
    %c0_i32 = arith.constant 0 : i32
    %c0_i32_0 = arith.constant 0 : i32
    %c0_i32_1 = arith.constant 0 : i32
    return %c0_i32, %c0_i32_0 : i32, i32
  }
  func.func @transform_4(%arg0: i32) -> (i32, i32) {
    %c0_i32 = arith.constant 0 : i32
    %c0_i32_0 = arith.constant 0 : i32
    %c0_i32_1 = arith.constant 0 : i32
    return %c0_i32, %c0_i32_0 : i32, i32
  }
  func.func @transform_5(%arg0: i32) -> (i32, i32) {
    %c0_i32 = arith.constant 0 : i32
    %c0_i32_0 = arith.constant 0 : i32
    %c0_i32_1 = arith.constant 0 : i32
    return %c0_i32, %c0_i32_0 : i32, i32
  }
  func.func @transform_6(%arg0: i32) -> (i32, i32) {
    %c0_i32 = arith.constant 0 : i32
    %c0_i32_0 = arith.constant 0 : i32
    %c0_i32_1 = arith.constant 0 : i32
    return %c0_i32, %c0_i32_0 : i32, i32
  }
  func.func @transform_7(%arg0: i32) -> (i32, i32) {
    %c0_i32 = arith.constant 0 : i32
    %c0_i32_0 = arith.constant 0 : i32
    %c0_i32_1 = arith.constant 0 : i32
    return %c0_i32, %c0_i32_0 : i32, i32
  }
  func.func @transform_8(%arg0: i32) -> (i32, i32) {
    %c0_i32 = arith.constant 0 : i32
    %c0_i32_0 = arith.constant 0 : i32
    %c0_i32_1 = arith.constant 0 : i32
    return %c0_i32, %c0_i32_0 : i32, i32
  }
  func.func @transform_9(%arg0: i32) -> (i32, i32) {
    %c0_i32 = arith.constant 0 : i32
    %c0_i32_0 = arith.constant 0 : i32
    %c0_i32_1 = arith.constant 0 : i32
    return %c0_i32, %c0_i32_0 : i32, i32
  }
  func.func @transform_10(%arg0: i32) -> (i32, i32) {
    %c0_i32 = arith.constant 0 : i32
    %c0_i32_0 = arith.constant 0 : i32
    %c0_i32_1 = arith.constant 0 : i32
    return %c0_i32, %c0_i32_0 : i32, i32
  }
  func.func @transform_11(%arg0: i32) -> (i32, i32) {
    %c0_i32 = arith.constant 0 : i32
    %c0_i32_0 = arith.constant 0 : i32
    %c0_i32_1 = arith.constant 0 : i32
    return %c0_i32, %c0_i32_0 : i32, i32
  }
  func.func @transform_12(%arg0: i32) -> (i32, i32) {
    %c0_i32 = arith.constant 0 : i32
    %c0_i32_0 = arith.constant 0 : i32
    %c0_i32_1 = arith.constant 0 : i32
    return %c0_i32, %c0_i32_0 : i32, i32
  }
  func.func @transform_13(%arg0: i32) -> (i32, i32) {
    %c0_i32 = arith.constant 0 : i32
    %c0_i32_0 = arith.constant 0 : i32
    %c0_i32_1 = arith.constant 0 : i32
    return %c0_i32, %c0_i32_0 : i32, i32
  }
  func.func @transform_14(%arg0: i32) -> (i32, i32) {
    %c0_i32 = arith.constant 0 : i32
    %c0_i32_0 = arith.constant 0 : i32
    %c0_i32_1 = arith.constant 0 : i32
    return %c0_i32, %c0_i32_0 : i32, i32
  }
  func.func @transform_15(%arg0: i32) -> (i32, i32, i32) {
    %c0_i32 = arith.constant 0 : i32
    %c0_i32_0 = arith.constant 0 : i32
    %c0_i32_1 = arith.constant 0 : i32
    return %arg0, %c0_i32, %c0_i32_0 : i32, i32, i32
  }
  func.func @transform_16(%arg0: i32) -> (i32, i32, i32) {
    %c0_i32 = arith.constant 0 : i32
    %c0_i32_0 = arith.constant 0 : i32
    %c0_i32_1 = arith.constant 0 : i32
    return %arg0, %c0_i32, %c0_i32_0 : i32, i32, i32
  }
}

</mosaic_0001>

<bundles_post_ra>
// kernel: tpu_custom_call.1
= control target key start
LH: loop header
LB: loop body
LE: loop exit
PB: predicated region body
PF: predicated region fallthrough
CT: control target
= control target key end

     0   :  { %s2707_s0 = inlined_call_operand.vmem [shape: f32[2,64,3], index: 0, kind: input, shape index: {}]   ;;  %s2708_s1 = inlined_call_operand.vmem [shape: bf16[3,128], index: 1, kind: input, shape index: {}]   ;;  %s2709_s2 = inlined_call_operand.vmem [shape: f32[1,128], index: 2, kind: input, shape index: {}]   ;;  %s2710_s3 = inlined_call_operand.vmem [shape: bf16[128,64], index: 3, kind: input, shape index: {}]   ;;  %s2711_s4 = inlined_call_operand.vmem [shape: f32[1,64], index: 4, kind: input, shape index: {}]   ;;  %s2712_s5 = inlined_call_operand.vmem [shape: bf16[128,64], index: 5, kind: input, shape index: {}]   ;;  %s2713_s6 = inlined_call_operand.vmem [shape: f32[1,64], index: 6, kind: input, shape index: {}]   ;;  %s2714_s7 = inlined_call_operand.vmem [shape: bf16[128,64], index: 7, kind: input, shape index: {}]   ;;  %s2715_s8 = inlined_call_operand.vmem [shape: f32[1,64], index: 8, kind: input, shape index: {}]   ;;  %s2716_s9 = inlined_call_operand.vmem [shape: bf16[128,64], index: 9, kind: input, shape index: {}]   ;;  %s2717_s10 = inlined_call_operand.vmem [shape: f32[1,64], index: 10, kind: input, shape index: {}]   ;;  %s2718_s11 = inlined_call_operand.vmem [shape: bf16[64,32], index: 11, kind: input, shape index: {}]   ;;  %s2719_s12 = inlined_call_operand.vmem [shape: f32[1,32], index: 12, kind: input, shape index: {}]   ;;  %s2720_s13 = inlined_call_operand.vmem [shape: bf16[64,32], index: 13, kind: input, shape index: {}]   ;;  %s2721_s14 = inlined_call_operand.vmem [shape: f32[1,32], index: 14, kind: input, shape index: {}]   ;;  %s2722_s15 = inlined_call_operand.hbm [shape: f32[2,1,32], index: 15, kind: output, shape index: {0}]   ;;  %s2723_s16 = inlined_call_operand.hbm [shape: f32[2,1,32], index: 16, kind: output, shape index: {1}]  }
   0x1   :  { %2729 = sst [smem:[#allocation13_spill]] %s2707_s0 }
   0x2   :  { %2730 = sst [smem:[#allocation14_spill]] %s2708_s1 }
   0x3   :  { %2731 = sst [smem:[#allocation15_spill]] %s2709_s2 }
   0x4   :  { %2732 = sst [smem:[#allocation16_spill]] %s2710_s3 }
   0x5   :  { %22 = vsyncpa [#allocation3], 0 }
   0x6   :  { %24 = vsyncpa [#allocation3 + $0x1], 0 }
   0x7   :  { %25 = vsyncpa [#allocation5], 0 }
   0x8   :  { %27 = vsyncpa [#allocation5 + $0x1], 0  ;;  %s2341_s21 = smov 0   ;;  %s2343_s22 = smov 0  }
   0x9   :  { %s2345_s23 = smov 0   ;;  %s2347_s24 = smov 0  }
   0xa LB: > { %2733 = sst [smem:[#allocation8_spill]] %s2237_s21  ;;  %s2362_s25 = sadd.s32 4294967295, %s2249_s24   ;;  %s2249_s24 = sphi %s2347_s24, %s2746_s24   ;;  %s2245_s23 = sphi %s2345_s23, %s2748_s23   ;;  %s2241_s22 = sphi %s2343_s22, %s2750_s22   ;;  %s2237_s21 = sphi %s2341_s21, %s2749_s21  }
   0xb   : > { %2734 = sst [smem:[#allocation9_spill]] %s2245_s23  ;;  %s1783_s26 = sadd.s32 4294967294, %s2249_s24  }
   0xc   : > { %s2366_s27 = sadd.s32 1, %s2249_s24   ;;  %s360_s28 = sadd.s32 1, %s2245_s23 }
   0xd   : > { %2735 = sst [smem:[#allocation10_spill]] %s2366_s27  ;;  %s357_s29 = ssub.s32 %s2249_s24, %s2366_s27 }
   0xe   : > { %p370_p0 = scmp.ne.s32.totalorder %s2245_s23, %s2241_s22  ;;  %p358_p1 = scmp.eq.s32.totalorder %s357_s29, 0 }
   0xf   : > { %p371_p2 = scmp.eq.s32.totalorder %s2362_s25, 1  ;;  %p376_p3 = scmp.ne.s32.totalorder %s2241_s22, %s2237_s21 }
  0x10   : > { %p377_p4 = scmp.eq.s32.totalorder %s1783_s26, 1  ;;  %p1786_p7 = scmp.ge.s32.totalorder %s2249_s24, 1 }
  0x11   : > { %s2377_s30 = scalar_select %p358_p1, %s2245_s23, %s360_s28  }
  0x12   : > { %p2379_p5 = por %p371_p2, %p370_p0  ;;  %p2383_p6 = por %p377_p4, %p376_p3 }
  0x13   : > { %2736 = sst [smem:[#allocation11_spill]] %s2377_s30  ;;  %p471_p8 = scmp.lt.s32.totalorder %s2249_s24, 3 }
  0x14   : > { %s2738_s17 = scalar_select %p2383_p6, 1, 0 }
  0x15   : > { %p472_p9 = pnand %p1786_p7, %p471_p8 }
  0x16   : > { %2739 = sst [smem:[#allocation12_spill]] %s2738_s17  ;;  %s2740_s1 = sld [smem:[#allocation14_spill]] (!%p472_p9)  ;;  %vm563_vm0 = vcmask (!%p472_p9), 1040384   ;;  %vm564_vm1 = vcmask (!%p472_p9), 1041408   ;;  %v2251_v1 = vmov (!%p472_p9), 65535   ;;  %vm550_vm2 = vcmask (!%p472_p9), 23552  }
  0x17   : > { %475 = sbr.rel (%p472_p9) target bundleno = 1511 (0x5e7), region = 80  ;;  %p524_p10 = scmp.lt.s32.totalorder (!%p472_p9), %s2362_s25, 1  ;;  %v565_v2 = vsel (!%p472_p9), %vm563_vm0, 4294967295, %v2251_v1  ;;  %v2123_v54 = vld [vmem:[%s2712_s5 + $0x20] sm:$0xff] (!%p472_p9)   ;;  %v2252_v55 = vmov (!%p472_p9), 0.0   ;;  %v2124_v56 = vld [vmem:[%s2712_s5 + $0x28] sm:$0xff] (!%p472_p9)  }
  0x18   : > { %v566_v3 = vsel (!%p472_p9), %vm564_vm1, %v565_v2, 0  ;;  %s2741_s3 = sld [smem:[#allocation16_spill]] (!%p472_p9)  ;;  %s2742_s23 = sld [smem:[#allocation13_spill]] (!%p472_p9)  ;;  %v2125_v57 = vld [vmem:[%s2712_s5 + $0x30] sm:$0xff] (!%p472_p9)   ;;  %v2126_v58 = vld [vmem:[%s2712_s5 + $0x38] sm:$0xff] (!%p472_p9)   ;;  %v2127_v59 = vld [vmem:[%s2712_s5] sm:$0xff] (!%p472_p9)  }
  0x19   : > { %s2743_s2 = sld [smem:[#allocation15_spill]] (!%p472_p9)  ;;  %vm2253_vm3 = vmmov (!%p472_p9), 0   ;;  %v1794_v60 = vld [vmem:[%s2711_s4] ss:$0 sm:$0xff] (!%p472_p9)  ;;  %vm791_vm4 = vcmask (!%p472_p9), 523264   ;;  %s2621_s30 = sand.u32 (!%p472_p9), 1, %s2241_s22  }
  0x1a   : > { %s523_s28 = scalar_lea.vmem (!%p472_p9), [#allocation4], %s2621_s30  ;;  %vm1594_vm5 = vcmask (!%p472_p9), 253952   ;;  %s2254_s19 = smov (!%p472_p9), [#allocation2]  }
  0x1b   : > { %s1700_s29 = sshll.u32 (!%p472_p9), %s523_s28, 4  ;;  %s2644_s29 = int_to_ptr.vmem [resolvable:$true] %s1700_s29 }
  0x1c   : > { %v542_v0 = vld [vmem:[%s2740_s1] sm:$0x3] (!%p472_p9)  ;;  %s1855_s1 = sshll.u32 (!%p472_p9), %s2362_s25, 4 }
  0x1d   : > { %v568_v6 = vand.u32 (!%p472_p9), %v566_v3, %v542_v0  ;;  %s2642_s17 = scalar_lea.hbm (!%p472_p9), %s2723_s16, %s1855_s1 }
  0x1e   : > { %s525_s20 = scalar_select %p524_p10, %s2362_s25, 1  ;;  %v2115_v4 = vld [vmem:[%s2741_s3] sm:$0xff]   ;;  %v2116_v5 = vld [vmem:[%s2741_s3 + $0x8] sm:$0xff]   ;;  %v2117_v7 = vld [vmem:[%s2741_s3 + $0x10] sm:$0xff]  }
  0x1f   : > { %1936 = vmatprep.subr.bf16.mxu1 %v2115_v4  ;;  %1926 = vmatprep.subr.bf16.mxu0 %v568_v6  ;;  %v2118_v17 = vld [vmem:[%s2741_s3 + $0x18] sm:$0xff]   ;;  %v2119_v20 = vld [vmem:[%s2741_s3 + $0x20] sm:$0xff]   ;;  %v2120_v22 = vld [vmem:[%s2741_s3 + $0x28] sm:$0xff]   ;;  %s2635_s25 = scalar_lea.hbm %s2722_s15, %s1855_s1 }
  0x20   : > { %s1859_s18 = sshll.u32 %s525_s20, 6  ;;  %1937 = vmatpush3.bf16.msra.mxu1 %v2115_v4  ;;  %1927 = vmatpush3.bf16.msra.mxu0 %v568_v6  ;;  %v2121_v23 = vld [vmem:[%s2741_s3 + $0x30] sm:$0xff]   ;;  %v2122_v24 = vld [vmem:[%s2741_s3 + $0x38] sm:$0xff]   ;;  %v1789_v25 = vld [vmem:[%s2743_s2] ss:$0 sm:$0xff]  ;;  %s1671_s20 = scalar_lea.sflag [#allocation3], %s2621_s30 }
  0x21   : > { %s528_s27 = scalar_lea.vmem %s2742_s23, %s1859_s18  ;;  %1938 = vmatprep.subr.bf16.mxu1 %v2116_v5  ;;  %1960 = vmatprep.subr.bf16.mxu0 %v2252_v55  ;;  %s2159_s2 = sshll.u32 %s2254_s19, 4  ;;  %s2160_s2 = int_to_ptr.vmem [resolvable:$false] %s2159_s2 }
  0x22   : > { %v530_v8 = vld [vmem:[%s528_s27] sm:$0xff]  ;;  %v531_v9 = vld [vmem:[%s528_s27 + $0x8] sm:$0xff]  ;;  %v532_v10 = vld [vmem:[%s528_s27 + $0x10] sm:$0xff]  ;;  %s2161_s3 = scalar_lea.vmem %s2160_s2, 32 }
  0x23   : > { %v538_v11 = vpack.c.bf16 %v531_v9, %v530_v8  ;;  %v533_v12 = vld [vmem:[%s528_s27 + $0x18] sm:$0xff]  ;;  %v534_v13 = vld [vmem:[%s528_s27 + $0x20] sm:$0xff]  ;;  %v535_v14 = vld [vmem:[%s528_s27 + $0x28] sm:$0xff] }
  0x24   : > { %v539_v15 = vpack.c.bf16 %v533_v12, %v532_v10  ;;  %v540_v16 = vpack.c.bf16 %v535_v14, %v534_v13  ;;  %v536_v18 = vld [vmem:[%s528_s27 + $0x30] sm:$0xff]  ;;  %v537_v19 = vld [vmem:[%s528_s27 + $0x38] sm:$0xff]  ;;  %1939 = vmatpush3.bf16.msra.mxu1 %v2116_v5  ;;  %s517_s27 = scalar_lea.vmem [#allocation2], %s2621_s30 }
  0x25   : > { %1928 = vmatprep.mubr.msk.bf16.mxu0 %vm550_vm2, %v538_v11  ;;  %1940 = vmatprep.subr.bf16.mxu1 %v2117_v7  ;;  %v541_v21 = vpack.c.bf16 %v537_v19, %v536_v18  ;;  %s1687_s26 = sshll.u32 %s517_s27, 4  ;;  %s2637_s26 = int_to_ptr.vmem [resolvable:$true] %s1687_s26 }
  0x26   : > { %1929 = vmatmul.mubr.msk.bf16.vlgmr.msra.gmra.mrb[0].mxu0 %vm550_vm2, %v539_v15  ;;  %s2155_s18 = scalar_lea.vmem %s2637_s26, 16  ;;  %p2162_p0 = scmp.lt.s32.totalorder %s2637_s26, %s2160_s2 }
  0x27   : > { %1932 = vmatprep.mubr.msk.bf16.mxu0 %vm550_vm2, %v540_v16  ;;  %1961 = vmatpush3.bf16.msra.mxu0 %v2123_v54  ;;  %v2135_v54 = vld [vmem:[%s2714_s7 + $0x20] sm:$0xff]   ;;  %p2156_p11 = scmp.ne.s32.totalorder %s2637_s26, %s2155_s18  ;;  %p2163_p1 = scmp.lt.s32.totalorder %s2161_s3, %s2155_s18 }
  0x28   : > { %1941 = vmatpush3.bf16.msra.mxu1 %v2117_v7  ;;  %1962 = vmatprep.subr.bf16.mxu0 %v2252_v55 }
  0x29   : > { %1942 = vmatprep.subr.bf16.mxu1 %v2118_v17  ;;  %p2157_p12 = pnand %p2156_p11, %p2379_p5  ;;  %p2164_p2 = por %p2163_p1, %p2162_p0 }
  0x2b   : > { %1963 = vmatpush3.bf16.msra.mxu0 %v2124_v56  ;;  %v2136_v56 = vld [vmem:[%s2714_s7 + $0x28] sm:$0xff]   ;;  %p2158_p13 = pneg %p2157_p12 }
  0x2c   : > { %1943 = vmatpush3.bf16.msra.mxu1 %v2118_v17  ;;  %1964 = vmatprep.subr.bf16.mxu0 %v2252_v55 }
  0x2d   : > { %1944 = vmatprep.subr.bf16.mxu1 %v2119_v20  ;;  %p2165_p3 = pnand %p2164_p2, %p2158_p13 }
  0x2e   : > { %1933 = vmatmul.mubr.msk.bf16.gmra.mrb[4].mxu0 %vm550_vm2, %v541_v21 }
  0x2f   : > { %1965 = vmatpush3.bf16.msra.mxu0 %v2125_v57  ;;  %1968 = vmatprep.mubr.msk.bf16.mxu0 %vm2253_vm3, %v2252_v55  ;;  %v2137_v57 = vld [vmem:[%s2714_s7 + $0x30] sm:$0xff]  }
  0x30   : > { %1945 = vmatpush3.bf16.msra.mxu1 %v2119_v20  ;;  %1966 = vmatprep.subr.bf16.mxu0 %v2252_v55 }
  0x31   : > { %1946 = vmatprep.subr.bf16.mxu1 %v2120_v22 }
  0x33   : > { %1967 = vmatpush3.bf16.msra.mxu0 %v2126_v58  ;;  %v2138_v58 = vld [vmem:[%s2714_s7 + $0x38] sm:$0xff]  }
  0x34   : > { %1947 = vmatpush3.bf16.msra.mxu1 %v2120_v22  ;;  %1972 = vmatprep.subr.bf16.mxu0 %v2127_v59 }
  0x35   : > { %1948 = vmatprep.subr.bf16.mxu1 %v2121_v23 }
  0x38   : > { %1949 = vmatpush3.bf16.msra.mxu1 %v2121_v23 }
  0x39   : > { %1950 = vmatprep.subr.bf16.mxu1 %v2122_v24 }
  0x3c   : > { %1951 = vmatpush3.bf16.msra.mxu1 %v2122_v24 }
  0x3d   : > { %1988 = vmatprep.subr.bf16.mxu1 %v2252_v55 }
  0xf9   : > { %v1930_v26 = vpop.f32.mrb[0].mxu0 }
  0xfa   : > { %v613_v27 = vadd.f32 %v1930_v26, %v1789_v25  ;;  %v604_v28 = vpop.f32.mrb[1].mxu0 }
  0xfb   : > { %v605_v29 = vadd.f32 %v1789_v25, %v604_v28  ;;  %v1931_v30 = vpop.f32.mrb[2].mxu0 }
  0xfc   : > { %v616_v31 = vadd.f32 %v1931_v30, %v1789_v25  ;;  %v607_v32 = vpop.f32.mrb[3].mxu0  ;;  %v637_v34 = vmax.f32 %v613_v27, 0.0 }
  0xfd   : > { %v608_v33 = vadd.f32 %v1789_v25, %v607_v32  ;;  %v635_v36 = vmax.f32 %v605_v29, 0.0 }
  0xfe   : > { %v638_v35 = vmax.f32 %v616_v31, 0.0 }
  0xff   : > { %v636_v37 = vmax.f32 %v608_v33, 0.0 }
 0x100   : > { %v644_v38 = vpack.c.bf16 %v638_v35, %v637_v34 }
 0x101   : > { %v1934_v39 = vpop.f32.mrb[4].mxu0  ;;  %v643_v40 = vpack.c.bf16 %v636_v37, %v635_v36 }
 0x102   : > { %v629_v41 = vadd.f32 %v1934_v39, %v1789_v25  ;;  %v620_v42 = vpop.f32.mrb[5].mxu0 }
 0x103   : > { %v621_v43 = vadd.f32 %v1789_v25, %v620_v42  ;;  %v1935_v44 = vpop.f32.mrb[6].mxu0  ;;  %1952 = vmatprep.mubr.bf16.mxu1 %v643_v40 }
 0x104   : > { %v632_v45 = vadd.f32 %v1935_v44, %v1789_v25  ;;  %v623_v46 = vpop.f32.mrb[7].mxu0  ;;  %1953 = vmatmul.mubr.bf16.vlgmr.msra.gmra.mrb[0].mxu1 %v644_v38  ;;  %v641_v48 = vmax.f32 %v629_v41, 0.0 }
 0x105   : > { %v624_v47 = vadd.f32 %v1789_v25, %v623_v46  ;;  %v639_v50 = vmax.f32 %v621_v43, 0.0  ;;  %1989 = vmatpush3.bf16.msra.mxu1 %v2135_v54 }
 0x106   : > { %v642_v49 = vmax.f32 %v632_v45, 0.0  ;;  %1990 = vmatprep.subr.bf16.mxu1 %v2252_v55 }
 0x107   : > { %v640_v51 = vmax.f32 %v624_v47, 0.0  ;;  %v2128_v47 = vld [vmem:[%s2712_s5 + $0x8] sm:$0xff]  }
 0x108   : > { %v646_v52 = vpack.c.bf16 %v642_v49, %v641_v48  ;;  %v2129_v48 = vld [vmem:[%s2712_s5 + $0x10] sm:$0xff]   ;;  %v2130_v49 = vld [vmem:[%s2712_s5 + $0x18] sm:$0xff]  }
 0x109   : > { %v645_v53 = vpack.c.bf16 %v640_v51, %v639_v50  ;;  %v2131_v50 = vld [vmem:[%s2714_s7] sm:$0xff]   ;;  %v2132_v51 = vld [vmem:[%s2714_s7 + $0x8] sm:$0xff]   ;;  %1991 = vmatpush3.bf16.msra.mxu1 %v2136_v56 }
 0x10a   : > { %1992 = vmatprep.subr.bf16.mxu1 %v2252_v55 }
 0x10b   : > { %1956 = vmatprep.mubr.bf16.mxu1 %v645_v53  ;;  %v2134_v53 = vld [vmem:[%s2714_s7 + $0x18] sm:$0xff]  }
 0x10c   : > { %1957 = vmatmul.mubr.bf16.gmra.mrb[4].mxu1 %v646_v52  ;;  %v2133_v52 = vld [vmem:[%s2714_s7 + $0x10] sm:$0xff]  }
 0x10d   : > { %1996 = vmatprep.mubr.msk.bf16.mxu1 %vm2253_vm3, %v2252_v55  ;;  %1993 = vmatpush3.bf16.msra.mxu1 %v2137_v57 }
 0x10e   : > { %1994 = vmatprep.subr.bf16.mxu1 %v2252_v55 }
 0x111   : > { %1995 = vmatpush3.bf16.msra.mxu1 %v2138_v58 }
 0x112   : > { %2016 = vmatprep.subr.bf16.mxu1 %v2252_v55 }
 0x1d7   : > { %v1954_v61 = vpop.f32.mrb[0].mxu1 }
 0x1d8   : > { %v761_v62 = vadd.f32 %v1954_v61, %v1794_v60  ;;  %v752_v63 = vpop.f32.mrb[1].mxu1 }
 0x1d9   : > { %v753_v0 = vadd.f32 %v1794_v60, %v752_v63  ;;  %v1955_v1 = vpop.f32.mrb[2].mxu1 }
 0x1da   : > { %v764_v2 = vadd.f32 %v1955_v1, %v1794_v60  ;;  %v755_v3 = vpop.f32.mrb[3].mxu1  ;;  %v785_v5 = vmax.f32 %v761_v62, 0.0  ;;  %v901_v62 = vlaneseq }
 0x1db   : > { %v756_v4 = vadd.f32 %v1794_v60, %v755_v3  ;;  %v783_v7 = vmax.f32 %v753_v0, 0.0 }
 0x1dc   : > { %v786_v6 = vmax.f32 %v764_v2, 0.0  ;;  %v794_v21 = vsel %vm791_vm4, %v785_v5, -inf  ;;  %v902_v0 = vshrl.u32 %v901_v62, 7 }
 0x1dd   : > { %v784_v8 = vmax.f32 %v756_v4, 0.0  ;;  %v792_v24 = vsel %vm791_vm4, %v783_v7, -inf  ;;  %v1816_v4 = vld [vmem:[%s2713_s6] ss:$0 sm:$0xff] }
 0x1de   : > { %v830_v9 = vpack.c.bf16 %v786_v6, %v785_v5  ;;  %v795_v28 = vsel %vm791_vm4, %v786_v6, -inf  ;;  %v2505_v1 = vsub.s32 0, %v902_v0  ;;  %v2140_v0 = vld [vmem:[%s2716_s9 + $0x8] sm:$0xff]  }
 0x1df   : > { %v829_v10 = vpack.c.bf16 %v784_v8, %v783_v7  ;;  %v1958_v11 = vpop.f32.mrb[4].mxu1  ;;  %v793_v32 = vsel %vm791_vm4, %v784_v8, -inf }
 0x1e0   : > { %v777_v12 = vadd.f32 %v1958_v11, %v1794_v60  ;;  %v768_v13 = vpop.f32.mrb[5].mxu1 }
 0x1e1   : > { %v769_v14 = vadd.f32 %v1794_v60, %v768_v13  ;;  %v1959_v15 = vpop.f32.mrb[6].mxu1 }
 0x1e2   : > { %v789_v16 = vmax.f32 %v777_v12, 0.0  ;;  %v780_v17 = vadd.f32 %v1959_v15, %v1794_v60  ;;  %v771_v18 = vpop.f32.mrb[7].mxu1 }
 0x1e3   : > { %v787_v19 = vmax.f32 %v769_v14, 0.0  ;;  %v772_v20 = vadd.f32 %v1794_v60, %v771_v18 }
 0x1e4   : > { %v800_v22 = vsel %vm791_vm4, %v789_v16, -inf  ;;  %v790_v23 = vmax.f32 %v780_v17, 0.0 }
 0x1e5   : > { %v801_v25 = vmax.f32 %v794_v21, %v800_v22  ;;  %v796_v26 = vsel %vm791_vm4, %v787_v19, -inf  ;;  %v788_v27 = vmax.f32 %v772_v20, 0.0 }
 0x1e6   : > { %v797_v29 = vmax.f32 %v792_v24, %v796_v26  ;;  %v802_v30 = vsel %vm791_vm4, %v790_v23, -inf  ;;  %v832_v31 = vpack.c.bf16 %v790_v23, %v789_v16 }
 0x1e7   : > { %v803_v33 = vmax.f32 %v795_v28, %v802_v30  ;;  %v798_v34 = vsel %vm791_vm4, %v788_v27, -inf  ;;  %v831_v35 = vpack.c.bf16 %v788_v27, %v787_v19 }
 0x1e8   : > { %v799_v36 = vmax.f32 %v793_v32, %v798_v34 }
 0x1e9   : > { %v805_v37 = vmax.f32 %v801_v25, %v803_v33 }
 0x1ea   : > { %v804_v38 = vmax.f32 %v797_v29, %v799_v36 }
 0x1ec   : > { %v806_v39 = vmax.f32 %v804_v38, %v805_v37 }
 0x1ee   : > { %v807_v40 = vrot.slane %v806_v39, 4 }
 0x1f0   : > { %v808_v41 = vmax.f32 %v806_v39, %v807_v40 }
 0x1f2   : > { %v809_v42 = vrot.slane %v808_v41, 2 }
 0x1f4   : > { %v810_v43 = vmax.f32 %v808_v41, %v809_v42 }
 0x1f6   : > { %v811_v44 = vrot.slane %v810_v43, 1 }
 0x1f8   : > { %v812_v45 = vmax.f32 %v810_v43, %v811_v44 }
 0x1fa   : > { %v833_v46 = vpack.c.bf16 %v812_v45, %v812_v45 }
 0x1fc   : > { %1969 = vmatmul.mubr.msk.bf16.vlgmr.msra.gmra.mrb[8].mxu0 %vm791_vm4, %v833_v46 }
 0x1fd   : > { %1973 = vmatpush3.bf16.msra.mxu0 %v2127_v59  ;;  %1980 = vmatprep.mubr.msk.bf16.mxu0 %vm791_vm4, %v829_v10 }
 0x1fe   : > { %1974 = vmatprep.subr.bf16.mxu0 %v2128_v47 }
 0x201   : > { %1975 = vmatpush3.bf16.msra.mxu0 %v2128_v47 }
 0x202   : > { %1976 = vmatprep.subr.bf16.mxu0 %v2129_v48 }
 0x205   : > { %1977 = vmatpush3.bf16.msra.mxu0 %v2129_v48 }
 0x206   : > { %1978 = vmatprep.subr.bf16.mxu0 %v2130_v49 }
 0x209   : > { %1979 = vmatpush3.bf16.msra.mxu0 %v2130_v49 }
 0x20a   : > { %2000 = vmatprep.subr.bf16.mxu0 %v2131_v50 }
 0x20c   : > { %1981 = vmatmul.mubr.msk.bf16.vlgmr.msra.gmra.mrb[12].mxu0 %vm791_vm4, %v830_v9 }
 0x20d   : > { %1984 = vmatprep.mubr.msk.bf16.mxu0 %vm791_vm4, %v831_v35  ;;  %2001 = vmatpush3.bf16.msra.mxu0 %v2131_v50 }
 0x20e   : > { %2002 = vmatprep.subr.bf16.mxu0 %v2132_v51 }
 0x211   : > { %2003 = vmatpush3.bf16.msra.mxu0 %v2132_v51 }
 0x212   : > { %2004 = vmatprep.subr.bf16.mxu0 %v2133_v52 }
 0x214   : > { %1985 = vmatmul.mubr.msk.bf16.gmra.mrb[16].mxu0 %vm791_vm4, %v832_v31 }
 0x215   : > { %2005 = vmatpush3.bf16.msra.mxu0 %v2133_v52 }
 0x216   : > { %2006 = vmatprep.subr.bf16.mxu0 %v2134_v53 }
 0x219   : > { %2007 = vmatpush3.bf16.msra.mxu0 %v2134_v53 }
 0x2cf   : > { %v895_v59 = vpop.f32.mrb[8].mxu0 }
 0x2d0   : > { %v1970_v60 = vpop.f32.mrb[9].mxu0  ;;  %v904_v2 = vrot.slane %v895_v59, %v2505_v1 }
 0x2d1   : > { %v898_v61 = vpop.f32.mrb[10].mxu0 }
 0x2d2   : > { %v1971_v63 = vpop.f32.mrb[11].mxu0 }
 0x2d3   : > { %v2139_v63 = vld [vmem:[%s2716_s9] sm:$0xff]  }
 0x2d4   : > { %2028 = vmatprep.subr.bf16.mxu0 %v2139_v63 }
 0x2df   : > { %v1982_v3 = vpop.f32.mrb[12].mxu0 }
 0x2e0   : > { %v984_v5 = vadd.f32 %v1982_v3, %v904_v2  ;;  %v975_v6 = vpop.f32.mrb[13].mxu0  ;;  %v2142_v3 = vld [vmem:[%s2716_s9 + $0x18] sm:$0xff]  }
 0x2e1   : > { %v976_v7 = vadd.f32 %v975_v6, %v904_v2  ;;  %v1983_v8 = vpop.f32.mrb[14].mxu0  ;;  %v2145_v6 = vld [vmem:[%s2716_s9 + $0x30] sm:$0xff]  }
 0x2e2   : > { %v1015_v9 = vadd.f32 %v1816_v4, %v984_v5  ;;  %v987_v10 = vadd.f32 %v1983_v8, %v904_v2  ;;  %v978_v11 = vpop.f32.mrb[15].mxu0  ;;  %v2144_v5 = vld [vmem:[%s2716_s9 + $0x28] sm:$0xff]  }
 0x2e3   : > { %v1013_v12 = vadd.f32 %v1816_v4, %v976_v7  ;;  %v979_v13 = vadd.f32 %v978_v11, %v904_v2  ;;  %v2146_v7 = vld [vmem:[%s2716_s9 + $0x38] sm:$0xff]  }
 0x2e4   : > { %v1016_v14 = vadd.f32 %v1816_v4, %v987_v10  ;;  %v1023_v16 = vmax.f32 %v1015_v9, 0.0 }
 0x2e5   : > { %v1014_v15 = vadd.f32 %v1816_v4, %v979_v13  ;;  %v1021_v18 = vmax.f32 %v1013_v12, 0.0 }
 0x2e6   : > { %v1024_v17 = vmax.f32 %v1016_v14, 0.0  ;;  %v1031_v36 = vsel %vm791_vm4, %v1023_v16, -inf }
 0x2e7   : > { %v1022_v19 = vmax.f32 %v1014_v15, 0.0  ;;  %v1986_v20 = vpop.f32.mrb[16].mxu0  ;;  %v1029_v39 = vsel %vm791_vm4, %v1021_v18, -inf }
 0x2e8   : > { %v1067_v21 = vpack.c.bf16 %v1024_v17, %v1023_v16  ;;  %v1000_v22 = vadd.f32 %v1986_v20, %v904_v2  ;;  %v991_v23 = vpop.f32.mrb[17].mxu0  ;;  %v1032_v43 = vsel %vm791_vm4, %v1024_v17, -inf  ;;  %v1830_v20 = vld [vmem:[%s2715_s8] ss:$0 sm:$0xff] }
 0x2e9   : > { %v1066_v24 = vpack.c.bf16 %v1022_v19, %v1021_v18  ;;  %v992_v25 = vadd.f32 %v991_v23, %v904_v2  ;;  %v1987_v26 = vpop.f32.mrb[18].mxu0  ;;  %v1030_v47 = vsel %vm791_vm4, %v1022_v19, -inf }
 0x2ea   : > { %v1019_v27 = vadd.f32 %v1816_v4, %v1000_v22  ;;  %v1003_v28 = vadd.f32 %v1987_v26, %v904_v2  ;;  %v994_v29 = vpop.f32.mrb[19].mxu0 }
 0x2eb   : > { %v1017_v30 = vadd.f32 %v1816_v4, %v992_v25  ;;  %v995_v31 = vadd.f32 %v994_v29, %v904_v2  ;;  %2008 = vmatprep.mubr.msk.bf16.mxu0 %vm791_vm4, %v1066_v24  ;;  %v2141_v2 = vld [vmem:[%s2716_s9 + $0x10] sm:$0xff]  }
 0x2ec   : > { %v1027_v32 = vmax.f32 %v1019_v27, 0.0  ;;  %v1020_v33 = vadd.f32 %v1816_v4, %v1003_v28  ;;  %2009 = vmatmul.mubr.msk.bf16.vlgmr.msra.gmra.mrb[20].mxu0 %vm791_vm4, %v1067_v21 }
 0x2ed   : > { %v1025_v34 = vmax.f32 %v1017_v30, 0.0  ;;  %v1018_v35 = vadd.f32 %v1816_v4, %v995_v31  ;;  %2029 = vmatpush3.bf16.msra.mxu0 %v2139_v63  ;;  %v2143_v4 = vld [vmem:[%s2716_s9 + $0x20] sm:$0xff]  }
 0x2ee   : > { %v1037_v37 = vsel %vm791_vm4, %v1027_v32, -inf  ;;  %v1028_v38 = vmax.f32 %v1020_v33, 0.0  ;;  %2030 = vmatprep.subr.bf16.mxu0 %v2140_v0 }
 0x2ef   : > { %v1038_v40 = vmax.f32 %v1031_v36, %v1037_v37  ;;  %v1033_v41 = vsel %vm791_vm4, %v1025_v34, -inf  ;;  %v1026_v42 = vmax.f32 %v1018_v35, 0.0 }
 0x2f0   : > { %v1034_v44 = vmax.f32 %v1029_v39, %v1033_v41  ;;  %v1039_v45 = vsel %vm791_vm4, %v1028_v38, -inf  ;;  %v1069_v46 = vpack.c.bf16 %v1028_v38, %v1027_v32 }
 0x2f1   : > { %v1040_v48 = vmax.f32 %v1032_v43, %v1039_v45  ;;  %v1035_v49 = vsel %vm791_vm4, %v1026_v42, -inf  ;;  %v1068_v50 = vpack.c.bf16 %v1026_v42, %v1025_v34  ;;  %2031 = vmatpush3.bf16.msra.mxu0 %v2140_v0 }
 0x2f2   : > { %v1036_v51 = vmax.f32 %v1030_v47, %v1035_v49  ;;  %2032 = vmatprep.subr.bf16.mxu0 %v2141_v2 }
 0x2f3   : > { %v1042_v52 = vmax.f32 %v1038_v40, %v1040_v48  ;;  %2012 = vmatprep.mubr.msk.bf16.mxu0 %vm791_vm4, %v1068_v50 }
 0x2f4   : > { %v1041_v53 = vmax.f32 %v1034_v44, %v1036_v51  ;;  %2013 = vmatmul.mubr.msk.bf16.gmra.mrb[24].mxu0 %vm791_vm4, %v1069_v46 }
 0x2f5   : > { %2033 = vmatpush3.bf16.msra.mxu0 %v2141_v2 }
 0x2f6   : > { %v1043_v54 = vmax.f32 %v1041_v53, %v1042_v52  ;;  %2034 = vmatprep.subr.bf16.mxu0 %v2142_v3 }
 0x2f8   : > { %v1044_v56 = vrot.slane %v1043_v54, 4 }
 0x2f9   : > { %2035 = vmatpush3.bf16.msra.mxu0 %v2142_v3 }
 0x2fa   : > { %v1045_v57 = vmax.f32 %v1043_v54, %v1044_v56  ;;  %2056 = vmatprep.subr.bf16.mxu0 %v2252_v55 }
 0x2fc   : > { %v1046_v58 = vrot.slane %v1045_v57, 2 }
 0x2fe   : > { %v1047_v59 = vmax.f32 %v1045_v57, %v1046_v58 }
 0x300   : > { %v1048_v60 = vrot.slane %v1047_v59, 1 }
 0x302   : > { %v1049_v61 = vmax.f32 %v1047_v59, %v1048_v60 }
 0x304   : > { %v1070_v62 = vpack.c.bf16 %v1049_v61, %v1049_v61 }
 0x306   : > { %1997 = vmatmul.mubr.msk.bf16.vlgmr.msra.gmra.mrb[8].mxu1 %vm791_vm4, %v1070_v62 }
 0x307   : > { %2024 = vmatprep.mubr.msk.bf16.mxu1 %vm2253_vm3, %v2252_v55  ;;  %2017 = vmatpush3.bf16.msra.mxu1 %v2143_v4 }
 0x308   : > { %2018 = vmatprep.subr.bf16.mxu1 %v2252_v55 }
 0x30b   : > { %2019 = vmatpush3.bf16.msra.mxu1 %v2144_v5 }
 0x30c   : > { %2020 = vmatprep.subr.bf16.mxu1 %v2252_v55 }
 0x30f   : > { %2021 = vmatpush3.bf16.msra.mxu1 %v2145_v6 }
 0x310   : > { %2022 = vmatprep.subr.bf16.mxu1 %v2252_v55 }
 0x313   : > { %2023 = vmatpush3.bf16.msra.mxu1 %v2146_v7 }
 0x314   : > { %2044 = vmatprep.subr.bf16.mxu1 %v2252_v55 }
 0x3bf   : > { %v2010_v8 = vpop.f32.mrb[20].mxu0 }
 0x3c0   : > { %v1212_v9 = vpop.f32.mrb[21].mxu0 }
 0x3c1   : > { %v2011_v10 = vpop.f32.mrb[22].mxu0 }
 0x3c2   : > { %v1215_v11 = vpop.f32.mrb[23].mxu0 }
 0x3c7   : > { %v2014_v12 = vpop.f32.mrb[24].mxu0 }
 0x3c8   : > { %v1228_v13 = vpop.f32.mrb[25].mxu0 }
 0x3c9   : > { %v2015_v14 = vpop.f32.mrb[26].mxu0 }
 0x3ca   : > { %v1231_v15 = vpop.f32.mrb[27].mxu0 }
 0x3d9   : > { %v1132_v16 = vpop.f32.mrb[8].mxu1 }
 0x3da   : > { %v1141_v17 = vrot.slane %v1132_v16, %v2505_v1  ;;  %v1998_v18 = vpop.f32.mrb[9].mxu1  ;;  %v2153_v16 = vld [vmem:[%s2720_s13 + $0x18] sm:$0xff]  }
 0x3db   : > { %v1135_v19 = vpop.f32.mrb[10].mxu1 }
 0x3dc   : > { %v1999_v21 = vpop.f32.mrb[11].mxu1  ;;  %v1213_v22 = vadd.f32 %v1212_v9, %v1141_v17  ;;  %v1216_v23 = vadd.f32 %v1215_v11, %v1141_v17  ;;  %v1221_v24 = vadd.f32 %v2010_v8, %v1141_v17  ;;  %v1224_v25 = vadd.f32 %v2011_v10, %v1141_v17  ;;  %v2147_v10 = vld [vmem:[%s2720_s13] sm:$0xff]  }
 0x3dd   : > { %v1229_v26 = vadd.f32 %v1228_v13, %v1141_v17  ;;  %v1232_v27 = vadd.f32 %v1231_v15, %v1141_v17  ;;  %v1237_v28 = vadd.f32 %v2014_v12, %v1141_v17  ;;  %v1240_v29 = vadd.f32 %v2015_v14, %v1141_v17  ;;  %v2148_v11 = vld [vmem:[%s2718_s11] sm:$0xff]   ;;  %v2149_v12 = vld [vmem:[%s2720_s13 + $0x8] sm:$0xff]   ;;  %v2151_v14 = vld [vmem:[%s2720_s13 + $0x10] sm:$0xff]  }
 0x3de   : > { %v1250_v30 = vadd.f32 %v1830_v20, %v1213_v22  ;;  %v1251_v31 = vadd.f32 %v1830_v20, %v1216_v23  ;;  %v1252_v32 = vadd.f32 %v1830_v20, %v1221_v24  ;;  %v1253_v33 = vadd.f32 %v1830_v20, %v1224_v25  ;;  %v2150_v13 = vld [vmem:[%s2718_s11 + $0x8] sm:$0xff]   ;;  %v2152_v15 = vld [vmem:[%s2718_s11 + $0x10] sm:$0xff]   ;;  %v2154_v17 = vld [vmem:[%s2718_s11 + $0x18] sm:$0xff]  }
 0x3df   : > { %v1254_v34 = vadd.f32 %v1830_v20, %v1229_v26  ;;  %v1255_v35 = vadd.f32 %v1830_v20, %v1232_v27  ;;  %v1256_v36 = vadd.f32 %v1830_v20, %v1237_v28  ;;  %v1257_v37 = vadd.f32 %v1830_v20, %v1240_v29 }
 0x3e0   : > { %v1258_v38 = vmax.f32 %v1250_v30, 0.0  ;;  %v1259_v39 = vmax.f32 %v1251_v31, 0.0  ;;  %v1260_v40 = vmax.f32 %v1252_v32, 0.0  ;;  %v1261_v41 = vmax.f32 %v1253_v33, 0.0  ;;  %v1844_v30 = vld [vmem:[%s2717_s10] ss:$0 sm:$0xff] }
 0x3e1   : > { %v1262_v42 = vmax.f32 %v1254_v34, 0.0  ;;  %v1263_v43 = vmax.f32 %v1255_v35, 0.0  ;;  %v1264_v44 = vmax.f32 %v1256_v36, 0.0  ;;  %v1265_v45 = vmax.f32 %v1257_v37, 0.0 }
 0x3e2   : > { %v1266_v46 = vsel %vm791_vm4, %v1258_v38, -inf  ;;  %v1267_v47 = vsel %vm791_vm4, %v1259_v39, -inf  ;;  %v1303_v48 = vpack.c.bf16 %v1259_v39, %v1258_v38  ;;  %v1304_v49 = vpack.c.bf16 %v1261_v41, %v1260_v40 }
 0x3e3   : > { %v1270_v50 = vsel %vm791_vm4, %v1262_v42, -inf  ;;  %v1272_v51 = vsel %vm791_vm4, %v1263_v43, -inf  ;;  %v1305_v52 = vpack.c.bf16 %v1263_v43, %v1262_v42  ;;  %v1268_v53 = vsel %vm791_vm4, %v1260_v40, -inf }
 0x3e4   : > { %2036 = vmatprep.mubr.msk.bf16.mxu0 %vm791_vm4, %v1303_v48  ;;  %v1271_v54 = vmax.f32 %v1266_v46, %v1270_v50  ;;  %v1273_v56 = vmax.f32 %v1267_v47, %v1272_v51  ;;  %v1269_v57 = vsel %vm791_vm4, %v1261_v41, -inf  ;;  %v1274_v58 = vsel %vm791_vm4, %v1264_v44, -inf }
 0x3e5   : > { %2037 = vmatmul.mubr.msk.bf16.vlgmr.msra.gmra.mrb[28].mxu0 %vm791_vm4, %v1304_v49  ;;  %v1275_v59 = vmax.f32 %v1268_v53, %v1274_v58  ;;  %v1276_v60 = vsel %vm791_vm4, %v1265_v45, -inf  ;;  %v1306_v61 = vpack.c.bf16 %v1265_v45, %v1264_v44 }
 0x3e6   : > { %v1278_v62 = vmax.f32 %v1271_v54, %v1273_v56  ;;  %2040 = vmatprep.mubr.msk.bf16.mxu0 %vm791_vm4, %v1305_v52  ;;  %v1277_v63 = vmax.f32 %v1269_v57, %v1276_v60  ;;  %2057 = vmatpush3.bf16.msra.mxu0 %v2147_v10 }
 0x3e7   : > { %2058 = vmatprep.subr.bf16.mxu0 %v2252_v55 }
 0x3e8   : > { %v1279_v0 = vmax.f32 %v1275_v59, %v1277_v63 }
 0x3ea   : > { %v1280_v2 = vmax.f32 %v1278_v62, %v1279_v0  ;;  %2059 = vmatpush3.bf16.msra.mxu0 %v2149_v12 }
 0x3eb   : > { %2060 = vmatprep.subr.bf16.mxu0 %v2252_v55 }
 0x3ec   : > { %v1281_v3 = vrot.slane %v1280_v2, 4 }
 0x3ed   : > { %2041 = vmatmul.mubr.msk.bf16.gmra.mrb[32].mxu0 %vm791_vm4, %v1306_v61 }
 0x3ee   : > { %v1282_v4 = vmax.f32 %v1280_v2, %v1281_v3  ;;  %2064 = vmatprep.mubr.msk.bf16.mxu0 %vm2253_vm3, %v2252_v55  ;;  %2061 = vmatpush3.bf16.msra.mxu0 %v2151_v14 }
 0x3ef   : > { %2062 = vmatprep.subr.bf16.mxu0 %v2252_v55 }
 0x3f0   : > { %v1283_v5 = vrot.slane %v1282_v4, 2 }
 0x3f2   : > { %v1284_v6 = vmax.f32 %v1282_v4, %v1283_v5  ;;  %2063 = vmatpush3.bf16.msra.mxu0 %v2153_v16 }
 0x3f4   : > { %v1285_v7 = vrot.slane %v1284_v6, 1 }
 0x3f6   : > { %v1286_v8 = vmax.f32 %v1284_v6, %v1285_v7  ;;  %v1526_v7 = vld [vmem:[%s2719_s12] sm:$0x1] }
 0x3f8   : > { %v1307_v9 = vpack.c.bf16 %v1286_v8, %v1286_v8  ;;  %v1604_v8 = vld [vmem:[%s2721_s14] sm:$0x1] }
 0x3fa   : > { %2025 = vmatmul.mubr.msk.bf16.vlgmr.msra.gmra.mrb[12].mxu1 %vm791_vm4, %v1307_v9 }
 0x3fb   : > { %2052 = vmatprep.mubr.msk.bf16.mxu1 %vm2253_vm3, %v2252_v55  ;;  %2045 = vmatpush3.bf16.msra.mxu1 %v2148_v11 }
 0x3fc   : > { %2046 = vmatprep.subr.bf16.mxu1 %v2252_v55 }
 0x3ff   : > { %2047 = vmatpush3.bf16.msra.mxu1 %v2150_v13 }
 0x400   : > { %2048 = vmatprep.subr.bf16.mxu1 %v2252_v55 }
 0x403   : > { %2049 = vmatpush3.bf16.msra.mxu1 %v2152_v15 }
 0x404   : > { %2050 = vmatprep.subr.bf16.mxu1 %v2252_v55 }
 0x407   : > { %2051 = vmatpush3.bf16.msra.mxu1 %v2154_v17 }
 0x4b8   : > { %v2038_v18 = vpop.f32.mrb[28].mxu0 }
 0x4b9   : > { %v1449_v19 = vpop.f32.mrb[29].mxu0 }
 0x4ba   : > { %v2039_v20 = vpop.f32.mrb[30].mxu0 }
 0x4bb   : > { %v1452_v21 = vpop.f32.mrb[31].mxu0 }
 0x4c0   : > { %v2042_v22 = vpop.f32.mrb[32].mxu0 }
 0x4c1   : > { %v1465_v23 = vpop.f32.mrb[33].mxu0 }
 0x4c2   : > { %v2043_v24 = vpop.f32.mrb[34].mxu0 }
 0x4c3   : > { %v1468_v25 = vpop.f32.mrb[35].mxu0 }
 0x4cd   : > { %v1369_v26 = vpop.f32.mrb[12].mxu1 }
 0x4ce   : > { %v1378_v27 = vrot.slane %v1369_v26, %v2505_v1  ;;  %v2026_v28 = vpop.f32.mrb[13].mxu1 }
 0x4cf   : > { %v1372_v29 = vpop.f32.mrb[14].mxu1 }
 0x4d0   : > { %v2027_v55 = vpop.f32.mrb[15].mxu1  ;;  %v1450_v31 = vadd.f32 %v1449_v19, %v1378_v27  ;;  %v1458_v32 = vadd.f32 %v2038_v18, %v1378_v27  ;;  %v1453_v33 = vadd.f32 %v1452_v21, %v1378_v27  ;;  %v1461_v34 = vadd.f32 %v2039_v20, %v1378_v27 }
 0x4d1   : > { %v1466_v35 = vadd.f32 %v1465_v23, %v1378_v27  ;;  %v1474_v36 = vadd.f32 %v2042_v22, %v1378_v27  ;;  %v1469_v37 = vadd.f32 %v1468_v25, %v1378_v27  ;;  %v1477_v38 = vadd.f32 %v2043_v24, %v1378_v27 }
 0x4d2   : > { %v1487_v39 = vadd.f32 %v1844_v30, %v1450_v31  ;;  %v1488_v40 = vadd.f32 %v1844_v30, %v1453_v33  ;;  %v1489_v41 = vadd.f32 %v1844_v30, %v1458_v32  ;;  %v1490_v42 = vadd.f32 %v1844_v30, %v1461_v34 }
 0x4d3   : > { %v1491_v1 = vadd.f32 %v1844_v30, %v1466_v35  ;;  %v1492_v43 = vadd.f32 %v1844_v30, %v1469_v37  ;;  %v1493_v44 = vadd.f32 %v1844_v30, %v1474_v36  ;;  %v1494_v45 = vadd.f32 %v1844_v30, %v1477_v38 }
 0x4d4   : > { %v1495_v46 = vsel %vm791_vm4, %v1487_v39, -inf  ;;  %v1496_v47 = vsel %vm791_vm4, %v1488_v40, -inf  ;;  %v1497_v48 = vsel %vm791_vm4, %v1489_v41, -inf  ;;  %v1498_v49 = vsel %vm791_vm4, %v1490_v42, -inf }
 0x4d5   : > { %v1499_v50 = vsel %vm791_vm4, %v1491_v1, -inf  ;;  %v1501_v51 = vsel %vm791_vm4, %v1492_v43, -inf  ;;  %v1503_v52 = vsel %vm791_vm4, %v1493_v44, -inf  ;;  %v1505_v53 = vsel %vm791_vm4, %v1494_v45, -inf }
 0x4d6   : > { %v1500_v54 = vmax.f32 %v1495_v46, %v1499_v50  ;;  %v1502_v56 = vmax.f32 %v1496_v47, %v1501_v51  ;;  %v1504_v57 = vmax.f32 %v1497_v48, %v1503_v52  ;;  %v1506_v58 = vmax.f32 %v1498_v49, %v1505_v53 }
 0x4d8   : > { %v1507_v59 = vmax.f32 %v1500_v54, %v1502_v56  ;;  %v1508_v60 = vmax.f32 %v1504_v57, %v1506_v58 }
 0x4da   : > { %v1509_v61 = vmax.f32 %v1507_v59, %v1508_v60 }
 0x4dc   : > { %v1510_v62 = vrot.slane %v1509_v61, 4 }
 0x4de   : > { %v1511_v63 = vmax.f32 %v1509_v61, %v1510_v62 }
 0x4e0   : > { %v1512_v0 = vrot.slane %v1511_v63, 2 }
 0x4e2   : > { %v1513_v2 = vmax.f32 %v1511_v63, %v1512_v0 }
 0x4e4   : > { %v1514_v3 = vrot.slane %v1513_v2, 1 }
 0x4e6   : > { %v1515_v4 = vmax.f32 %v1513_v2, %v1514_v3 }
 0x4e8   : > { %v1516_v5 = vmax.f32 %v1515_v4, 0.0 }
 0x4ea   : > { %v1517_v6 = vpack.c.bf16 %v1516_v5, %v1516_v5 }
 0x4ec   : > { %2053 = vmatmul.mubr.msk.bf16.vlgmr.msra.gmra.mrb[16].mxu1 %vm791_vm4, %v1517_v6  ;;  %2065 = vmatmul.mubr.msk.bf16.vlgmr.msra.gmra.mrb[36].mxu0 %vm791_vm4, %v1517_v6 }
 0x5bf   : > { %v1588_v9 = vpop.f32.mrb[16].mxu1  ;;  %v1663_v10 = vpop.f32.mrb[36].mxu0 }
 0x5c0   : > { %v1589_v11 = vadd.f32 %v1588_v9, %v1526_v7  ;;  %v1664_v12 = vadd.f32 %v1663_v10, %v1604_v8  ;;  %v2054_v13 = vpop.f32.mrb[17].mxu1  ;;  %v2066_v14 = vpop.f32.mrb[37].mxu0 }
 0x5c1   : > { %v1591_v15 = vpop.f32.mrb[18].mxu1  ;;  %v1666_v16 = vpop.f32.mrb[38].mxu0 }
 0x5c2   : > { %v2055_v17 = vpop.f32.mrb[19].mxu1  ;;  %v2067_v18 = vpop.f32.mrb[39].mxu0  ;;  %1595 = vst.msk [vmem:[%s517_s27] sm:$0x1] %vm1594_vm5, %v1589_v11  ;;  %1669 = vst.msk [vmem:[%s523_s28] sm:$0x1] %vm1594_vm5, %v1664_v12 }
 0x5c3   : > { %2168 = shalt.err (!%p2165_p3)
}
 0x5c4   : > { %s2169_s1 = scalar_lea.hbm %s2635_s25, 16  ;;  %s2173_s21 = scalar_lea.hbm %s2722_s15, 32 }
 0x5c5   : > { %p2170_p4 = scmp.ne.s32.totalorder %s2635_s25, %s2169_s1  ;;  %p2174_p9 = scmp.lt.u32.totalorder %s2635_s25, %s2722_s15 }
 0x5c6   : > { %p2175_p10 = scmp.lt.u32.totalorder %s2173_s21, %s2169_s1  ;;  %p2177_p12 = scmp.lt.u32.totalorder %s2169_s1, %s2635_s25 }
 0x5c7   : > { %p2171_p7 = pnand %p2170_p4, %p2379_p5 }
 0x5c8   : > { %p2176_p11 = por %p2175_p10, %p2174_p9 }
 0x5c9   : > { %p2172_p8 = pneg %p2171_p7 }
 0x5ca   : > { %p2178_p13 = por %p2177_p12, %p2176_p11 }
 0x5cc   : > { %p2179_p0 = pnand %p2178_p13, %p2172_p8 }
 0x5ce   : > { %2182 = shalt.err (!%p2179_p0)
}
 0x5cf   : > { %2068 = dma.vmem_to_hbm [thread:$0]  (%p2379_p5), %s2637_s26, 16, %s2635_s25, %s1671_s20  }
 0x5d0   : > { %s1675_s3 = scalar_lea.sflag [#allocation5], %s2621_s30  ;;  %s2183_s18 = scalar_lea.vmem %s2644_s29, 16 }
 0x5d1   : > { %p2184_p1 = scmp.ne.s32.totalorder %s2644_s29, %s2183_s18  ;;  %s2255_s19 = smov [#allocation4]  }
 0x5d2   : > { %s2187_s1 = sshll.u32 %s2255_s19, 4  ;;  %s2188_s1 = int_to_ptr.vmem [resolvable:$false] %s2187_s1 }
 0x5d3   : > { %p2185_p2 = pnand %p2184_p1, %p2379_p5  ;;  %s2189_s27 = scalar_lea.vmem %s2188_s1, 32 }
 0x5d4   : > { %p2190_p4 = scmp.lt.s32.totalorder %s2644_s29, %s2188_s1  ;;  %p2191_p7 = scmp.lt.s32.totalorder %s2189_s27, %s2183_s18 }
 0x5d5   : > { %p2186_p3 = pneg %p2185_p2 }
 0x5d6   : > { %p2192_p8 = por %p2191_p7, %p2190_p4 }
 0x5d8   : > { %p2193_p9 = pnand %p2192_p8, %p2186_p3 }
 0x5da   : > { %2196 = shalt.err (!%p2193_p9)
}
 0x5db   : > { %s2197_s30 = scalar_lea.hbm %s2642_s17, 16  ;;  %s2201_s20 = scalar_lea.hbm %s2723_s16, 32 }
 0x5dc   : > { %p2198_p10 = scmp.ne.s32.totalorder %s2642_s17, %s2197_s30  ;;  %p2202_p13 = scmp.lt.u32.totalorder %s2642_s17, %s2723_s16 }
 0x5dd   : > { %p2203_p0 = scmp.lt.u32.totalorder %s2201_s20, %s2197_s30  ;;  %p2205_p2 = scmp.lt.u32.totalorder %s2197_s30, %s2642_s17 }
 0x5de   : > { %p2199_p11 = pnand %p2198_p10, %p2379_p5 }
 0x5df   : > { %p2204_p1 = por %p2203_p0, %p2202_p13 }
 0x5e0   : > { %p2200_p12 = pneg %p2199_p11 }
 0x5e1   : > { %p2206_p3 = por %p2205_p2, %p2204_p1 }
 0x5e3   : > { %p2207_p4 = pnand %p2206_p3, %p2200_p12 }
 0x5e5   : > { %2210 = shalt.err (!%p2207_p4)
}
 0x5e6   : > { %2069 = dma.vmem_to_hbm [thread:$0]  (%p2379_p5), %s2644_s29, 16, %s2642_s17, %s1675_s3  }
 0x5e7 PF: > { %s2744_s23 = sld [smem:[#allocation8_spill]]  ;;  %p2079_p7 = scmp.ge.s32.totalorder %s2249_s24, 2 }
 0x5e9   : > { %p2073_p8 = pnand %p2079_p7, %p2383_p6 }
 0x5ed   : > { %s1712_s18 = sand.u32 1, %s2744_s23  }
 0x5ee   : > { %s1713_s19 = scalar_lea.sflag [#allocation3], %s1712_s18 }
 0x5ef   : > { %2228 = dma.done.wait (!%p2073_p8), %s1713_s19, 16  }
 0x5f0   : > { %2230 = vsyncadd (!%p2073_p8), %s1713_s19, 4294967280  ;;  %s1721_s1 = scalar_lea.sflag [#allocation5], %s1712_s18 }
 0x5f1   : > { %2232 = dma.done.wait (!%p2073_p8), %s1721_s1, 16  }
 0x5f2   : > { %2234 = vsyncadd (!%p2073_p8), %s1721_s1, 4294967280  ;;  %s2746_s24 = sld [smem:[#allocation10_spill]]  ;;  %s2747_s0 = sld [smem:[#allocation9_spill]] }
 0x5f3   : > { %s2748_s23 = sld [smem:[#allocation11_spill]]  ;;  %s2749_s21 = smov %s2241_s22 }
 0x5f8   : > { %p30_p5 = scmp.ge.s32.totalorder %s2746_s24, 4   ;;  %s2750_s22 = smov %s2747_s0 }
 0x5fa   :  { %32 = sbr.rel (!%p30_p5) target bundleno = 10 (0xa), region = 132 }
 0x601   :  { %1725 = vsyncpa [#allocation3], 1 }
 0x602   :  { %1727 = vsyncpa [#allocation3 + $0x1], 1 }
 0x603   :  { %1728 = vsyncpa [#allocation5], 1 }
 0x604   :  { %1730 = vsyncpa [#allocation5 + $0x1], 1 }

// kernel: tpu_custom_call.1
= control target key start
LH: loop header
LB: loop body
LE: loop exit
PB: predicated region body
PF: predicated region fallthrough
CT: control target
= control target key end

     0   :  { %s2707_s0 = inlined_call_operand.vmem [shape: f32[2,64,3], index: 0, kind: input, shape index: {}]   ;;  %s2708_s1 = inlined_call_operand.vmem [shape: bf16[3,128], index: 1, kind: input, shape index: {}]   ;;  %s2709_s2 = inlined_call_operand.vmem [shape: f32[1,128], index: 2, kind: input, shape index: {}]   ;;  %s2710_s3 = inlined_call_operand.vmem [shape: bf16[128,64], index: 3, kind: input, shape index: {}]   ;;  %s2711_s4 = inlined_call_operand.vmem [shape: f32[1,64], index: 4, kind: input, shape index: {}]   ;;  %s2712_s5 = inlined_call_operand.vmem [shape: bf16[128,64], index: 5, kind: input, shape index: {}]   ;;  %s2713_s6 = inlined_call_operand.vmem [shape: f32[1,64], index: 6, kind: input, shape index: {}]   ;;  %s2714_s7 = inlined_call_operand.vmem [shape: bf16[128,64], index: 7, kind: input, shape index: {}]   ;;  %s2715_s8 = inlined_call_operand.vmem [shape: f32[1,64], index: 8, kind: input, shape index: {}]   ;;  %s2716_s9 = inlined_call_operand.vmem [shape: bf16[128,64], index: 9, kind: input, shape index: {}]   ;;  %s2717_s10 = inlined_call_operand.vmem [shape: f32[1,64], index: 10, kind: input, shape index: {}]   ;;  %s2718_s11 = inlined_call_operand.vmem [shape: bf16[64,32], index: 11, kind: input, shape index: {}]   ;;  %s2719_s12 = inlined_call_operand.vmem [shape: f32[1,32], index: 12, kind: input, shape index: {}]   ;;  %s2720_s13 = inlined_call_operand.vmem [shape: bf16[64,32], index: 13, kind: input, shape index: {}]   ;;  %s2721_s14 = inlined_call_operand.vmem [shape: f32[1,32], index: 14, kind: input, shape index: {}]   ;;  %s2722_s15 = inlined_call_operand.hbm [shape: f32[2,1,32], index: 15, kind: output, shape index: {0}]   ;;  %s2723_s16 = inlined_call_operand.hbm [shape: f32[2,1,32], index: 16, kind: output, shape index: {1}]  }
   0x1   :  { %2729 = sst [smem:[#allocation13_spill]] %s2707_s0 }
   0x2   :  { %2730 = sst [smem:[#allocation14_spill]] %s2708_s1 }
   0x3   :  { %2731 = sst [smem:[#allocation15_spill]] %s2709_s2 }
   0x4   :  { %2732 = sst [smem:[#allocation16_spill]] %s2710_s3 }
   0x5   :  { %22 = vsyncpa [#allocation3], 0 }
   0x6   :  { %24 = vsyncpa [#allocation3 + $0x1], 0 }
   0x7   :  { %25 = vsyncpa [#allocation5], 0 }
   0x8   :  { %27 = vsyncpa [#allocation5 + $0x1], 0  ;;  %s2341_s21 = smov 0   ;;  %s2343_s22 = smov 0  }
   0x9   :  { %s2345_s23 = smov 0   ;;  %s2347_s24 = smov 0  }
   0xa LB: > { %2733 = sst [smem:[#allocation8_spill]] %s2237_s21  ;;  %s2362_s25 = sadd.s32 4294967295, %s2249_s24   ;;  %s2249_s24 = sphi %s2347_s24, %s2746_s24   ;;  %s2245_s23 = sphi %s2345_s23, %s2748_s23   ;;  %s2241_s22 = sphi %s2343_s22, %s2750_s22   ;;  %s2237_s21 = sphi %s2341_s21, %s2749_s21  }
   0xb   : > { %2734 = sst [smem:[#allocation9_spill]] %s2245_s23  ;;  %s1783_s26 = sadd.s32 4294967294, %s2249_s24  }
   0xc   : > { %s2366_s27 = sadd.s32 1, %s2249_s24   ;;  %s360_s28 = sadd.s32 1, %s2245_s23 }
   0xd   : > { %2735 = sst [smem:[#allocation10_spill]] %s2366_s27  ;;  %s357_s29 = ssub.s32 %s2249_s24, %s2366_s27 }
   0xe   : > { %p370_p0 = scmp.ne.s32.totalorder %s2245_s23, %s2241_s22  ;;  %p358_p1 = scmp.eq.s32.totalorder %s357_s29, 0 }
   0xf   : > { %p371_p2 = scmp.eq.s32.totalorder %s2362_s25, 1  ;;  %p376_p3 = scmp.ne.s32.totalorder %s2241_s22, %s2237_s21 }
  0x10   : > { %p377_p4 = scmp.eq.s32.totalorder %s1783_s26, 1  ;;  %p1786_p7 = scmp.ge.s32.totalorder %s2249_s24, 1 }
  0x11   : > { %s2377_s30 = scalar_select %p358_p1, %s2245_s23, %s360_s28  }
  0x12   : > { %p2379_p5 = por %p371_p2, %p370_p0  ;;  %p2383_p6 = por %p377_p4, %p376_p3 }
  0x13   : > { %2736 = sst [smem:[#allocation11_spill]] %s2377_s30  ;;  %p471_p8 = scmp.lt.s32.totalorder %s2249_s24, 3 }
  0x14   : > { %s2738_s17 = scalar_select %p2383_p6, 1, 0 }
  0x15   : > { %p472_p9 = pnand %p1786_p7, %p471_p8 }
  0x16   : > { %2739 = sst [smem:[#allocation12_spill]] %s2738_s17  ;;  %s2740_s1 = sld [smem:[#allocation14_spill]] (!%p472_p9)  ;;  %vm563_vm0 = vcmask (!%p472_p9), 1040384   ;;  %vm564_vm1 = vcmask (!%p472_p9), 1041408   ;;  %v2251_v1 = vmov (!%p472_p9), 65535   ;;  %vm550_vm2 = vcmask (!%p472_p9), 23552  }
  0x17   : > { %475 = sbr.rel (%p472_p9) target bundleno = 1511 (0x5e7), region = 80  ;;  %p524_p10 = scmp.lt.s32.totalorder (!%p472_p9), %s2362_s25, 1  ;;  %v565_v2 = vsel (!%p472_p9), %vm563_vm0, 4294967295, %v2251_v1  ;;  %v2123_v54 = vld [vmem:[%s2712_s5 + $0x20] sm:$0xff] (!%p472_p9)   ;;  %v2252_v55 = vmov (!%p472_p9), 0.0   ;;  %v2124_v56 = vld [vmem:[%s2712_s5 + $0x28] sm:$0xff] (!%p472_p9)  }
  0x18   : > { %v566_v3 = vsel (!%p472_p9), %vm564_vm1, %v565_v2, 0  ;;  %s2741_s3 = sld [smem:[#allocation16_spill]] (!%p472_p9)  ;;  %s2742_s23 = sld [smem:[#allocation13_spill]] (!%p472_p9)  ;;  %v2125_v57 = vld [vmem:[%s2712_s5 + $0x30] sm:$0xff] (!%p472_p9)   ;;  %v2126_v58 = vld [vmem:[%s2712_s5 + $0x38] sm:$0xff] (!%p472_p9)   ;;  %v2127_v59 = vld [vmem:[%s2712_s5] sm:$0xff] (!%p472_p9)  }
  0x19   : > { %s2743_s2 = sld [smem:[#allocation15_spill]] (!%p472_p9)  ;;  %vm2253_vm3 = vmmov (!%p472_p9), 0   ;;  %v1794_v60 = vld [vmem:[%s2711_s4] ss:$0 sm:$0xff] (!%p472_p9)  ;;  %vm791_vm4 = vcmask (!%p472_p9), 523264   ;;  %s2621_s30 = sand.u32 (!%p472_p9), 1, %s2241_s22  }
  0x1a   : > { %s523_s28 = scalar_lea.vmem (!%p472_p9), [#allocation4], %s2621_s30  ;;  %vm1594_vm5 = vcmask (!%p472_p9), 253952   ;;  %s2254_s19 = smov (!%p472_p9), [#allocation2]  }
  0x1b   : > { %s1700_s29 = sshll.u32 (!%p472_p9), %s523_s28, 4  ;;  %s2644_s29 = int_to_ptr.vmem [resolvable:$true] %s1700_s29 }
  0x1c   : > { %v542_v0 = vld [vmem:[%s2740_s1] sm:$0x3] (!%p472_p9)  ;;  %s1855_s1 = sshll.u32 (!%p472_p9), %s2362_s25, 4 }
  0x1d   : > { %v568_v6 = vand.u32 (!%p472_p9), %v566_v3, %v542_v0  ;;  %s2642_s17 = scalar_lea.hbm (!%p472_p9), %s2723_s16, %s1855_s1 }
  0x1e   : > { %s525_s20 = scalar_select %p524_p10, %s2362_s25, 1  ;;  %v2115_v4 = vld [vmem:[%s2741_s3] sm:$0xff]   ;;  %v2116_v5 = vld [vmem:[%s2741_s3 + $0x8] sm:$0xff]   ;;  %v2117_v7 = vld [vmem:[%s2741_s3 + $0x10] sm:$0xff]  }
  0x1f   : > { %1936 = vmatprep.subr.bf16.mxu1 %v2115_v4  ;;  %1926 = vmatprep.subr.bf16.mxu0 %v568_v6  ;;  %v2118_v17 = vld [vmem:[%s2741_s3 + $0x18] sm:$0xff]   ;;  %v2119_v20 = vld [vmem:[%s2741_s3 + $0x20] sm:$0xff]   ;;  %v2120_v22 = vld [vmem:[%s2741_s3 + $0x28] sm:$0xff]   ;;  %s2635_s25 = scalar_lea.hbm %s2722_s15, %s1855_s1 }
  0x20   : > { %s1859_s18 = sshll.u32 %s525_s20, 6  ;;  %1937 = vmatpush3.bf16.msra.mxu1 %v2115_v4  ;;  %1927 = vmatpush3.bf16.msra.mxu0 %v568_v6  ;;  %v2121_v23 = vld [vmem:[%s2741_s3 + $0x30] sm:$0xff]   ;;  %v2122_v24 = vld [vmem:[%s2741_s3 + $0x38] sm:$0xff]   ;;  %v1789_v25 = vld [vmem:[%s2743_s2] ss:$0 sm:$0xff]  ;;  %s1671_s20 = scalar_lea.sflag [#allocation3], %s2621_s30 }
  0x21   : > { %s528_s27 = scalar_lea.vmem %s2742_s23, %s1859_s18  ;;  %1938 = vmatprep.subr.bf16.mxu1 %v2116_v5  ;;  %1960 = vmatprep.subr.bf16.mxu0 %v2252_v55  ;;  %s2159_s2 = sshll.u32 %s2254_s19, 4  ;;  %s2160_s2 = int_to_ptr.vmem [resolvable:$false] %s2159_s2 }
  0x22   : > { %v530_v8 = vld [vmem:[%s528_s27] sm:$0xff]  ;;  %v531_v9 = vld [vmem:[%s528_s27 + $0x8] sm:$0xff]  ;;  %v532_v10 = vld [vmem:[%s528_s27 + $0x10] sm:$0xff]  ;;  %s2161_s3 = scalar_lea.vmem %s2160_s2, 32 }
  0x23   : > { %v538_v11 = vpack.c.bf16 %v531_v9, %v530_v8  ;;  %v533_v12 = vld [vmem:[%s528_s27 + $0x18] sm:$0xff]  ;;  %v534_v13 = vld [vmem:[%s528_s27 + $0x20] sm:$0xff]  ;;  %v535_v14 = vld [vmem:[%s528_s27 + $0x28] sm:$0xff] }
  0x24   : > { %v539_v15 = vpack.c.bf16 %v533_v12, %v532_v10  ;;  %v540_v16 = vpack.c.bf16 %v535_v14, %v534_v13  ;;  %v536_v18 = vld [vmem:[%s528_s27 + $0x30] sm:$0xff]  ;;  %v537_v19 = vld [vmem:[%s528_s27 + $0x38] sm:$0xff]  ;;  %1939 = vmatpush3.bf16.msra.mxu1 %v2116_v5  ;;  %s517_s27 = scalar_lea.vmem [#allocation2], %s2621_s30 }
  0x25   : > { %1928 = vmatprep.mubr.msk.bf16.mxu0 %vm550_vm2, %v538_v11  ;;  %1940 = vmatprep.subr.bf16.mxu1 %v2117_v7  ;;  %v541_v21 = vpack.c.bf16 %v537_v19, %v536_v18  ;;  %s1687_s26 = sshll.u32 %s517_s27, 4  ;;  %s2637_s26 = int_to_ptr.vmem [resolvable:$true] %s1687_s26 }
  0x26   : > { %1929 = vmatmul.mubr.msk.bf16.vlgmr.msra.gmra.mrb[0].mxu0 %vm550_vm2, %v539_v15  ;;  %s2155_s18 = scalar_lea.vmem %s2637_s26, 16  ;;  %p2162_p0 = scmp.lt.s32.totalorder %s2637_s26, %s2160_s2 }
  0x27   : > { %1932 = vmatprep.mubr.msk.bf16.mxu0 %vm550_vm2, %v540_v16  ;;  %1961 = vmatpush3.bf16.msra.mxu0 %v2123_v54  ;;  %v2135_v54 = vld [vmem:[%s2714_s7 + $0x20] sm:$0xff]   ;;  %p2156_p11 = scmp.ne.s32.totalorder %s2637_s26, %s2155_s18  ;;  %p2163_p1 = scmp.lt.s32.totalorder %s2161_s3, %s2155_s18 }
  0x28   : > { %1941 = vmatpush3.bf16.msra.mxu1 %v2117_v7  ;;  %1962 = vmatprep.subr.bf16.mxu0 %v2252_v55 }
  0x29   : > { %1942 = vmatprep.subr.bf16.mxu1 %v2118_v17  ;;  %p2157_p12 = pnand %p2156_p11, %p2379_p5  ;;  %p2164_p2 = por %p2163_p1, %p2162_p0 }
  0x2b   : > { %1963 = vmatpush3.bf16.msra.mxu0 %v2124_v56  ;;  %v2136_v56 = vld [vmem:[%s2714_s7 + $0x28] sm:$0xff]   ;;  %p2158_p13 = pneg %p2157_p12 }
  0x2c   : > { %1943 = vmatpush3.bf16.msra.mxu1 %v2118_v17  ;;  %1964 = vmatprep.subr.bf16.mxu0 %v2252_v55 }
  0x2d   : > { %1944 = vmatprep.subr.bf16.mxu1 %v2119_v20  ;;  %p2165_p3 = pnand %p2164_p2, %p2158_p13 }
  0x2e   : > { %1933 = vmatmul.mubr.msk.bf16.gmra.mrb[4].mxu0 %vm550_vm2, %v541_v21 }
  0x2f   : > { %1965 = vmatpush3.bf16.msra.mxu0 %v2125_v57  ;;  %1968 = vmatprep.mubr.msk.bf16.mxu0 %vm2253_vm3, %v2252_v55  ;;  %v2137_v57 = vld [vmem:[%s2714_s7 + $0x30] sm:$0xff]  }
  0x30   : > { %1945 = vmatpush3.bf16.msra.mxu1 %v2119_v20  ;;  %1966 = vmatprep.subr.bf16.mxu0 %v2252_v55 }
  0x31   : > { %1946 = vmatprep.subr.bf16.mxu1 %v2120_v22 }
  0x33   : > { %1967 = vmatpush3.bf16.msra.mxu0 %v2126_v58  ;;  %v2138_v58 = vld [vmem:[%s2714_s7 + $0x38] sm:$0xff]  }
  0x34   : > { %1947 = vmatpush3.bf16.msra.mxu1 %v2120_v22  ;;  %1972 = vmatprep.subr.bf16.mxu0 %v2127_v59 }
  0x35   : > { %1948 = vmatprep.subr.bf16.mxu1 %v2121_v23 }
  0x38   : > { %1949 = vmatpush3.bf16.msra.mxu1 %v2121_v23 }
  0x39   : > { %1950 = vmatprep.subr.bf16.mxu1 %v2122_v24 }
  0x3c   : > { %1951 = vmatpush3.bf16.msra.mxu1 %v2122_v24 }
  0x3d   : > { %1988 = vmatprep.subr.bf16.mxu1 %v2252_v55 }
  0xf9   : > { %v1930_v26 = vpop.f32.mrb[0].mxu0 }
  0xfa   : > { %v613_v27 = vadd.f32 %v1930_v26, %v1789_v25  ;;  %v604_v28 = vpop.f32.mrb[1].mxu0 }
  0xfb   : > { %v605_v29 = vadd.f32 %v1789_v25, %v604_v28  ;;  %v1931_v30 = vpop.f32.mrb[2].mxu0 }
  0xfc   : > { %v616_v31 = vadd.f32 %v1931_v30, %v1789_v25  ;;  %v607_v32 = vpop.f32.mrb[3].mxu0  ;;  %v637_v34 = vmax.f32 %v613_v27, 0.0 }
  0xfd   : > { %v608_v33 = vadd.f32 %v1789_v25, %v607_v32  ;;  %v635_v36 = vmax.f32 %v605_v29, 0.0 }
  0xfe   : > { %v638_v35 = vmax.f32 %v616_v31, 0.0 }
  0xff   : > { %v636_v37 = vmax.f32 %v608_v33, 0.0 }
 0x100   : > { %v644_v38 = vpack.c.bf16 %v638_v35, %v637_v34 }
 0x101   : > { %v1934_v39 = vpop.f32.mrb[4].mxu0  ;;  %v643_v40 = vpack.c.bf16 %v636_v37, %v635_v36 }
 0x102   : > { %v629_v41 = vadd.f32 %v1934_v39, %v1789_v25  ;;  %v620_v42 = vpop.f32.mrb[5].mxu0 }
 0x103   : > { %v621_v43 = vadd.f32 %v1789_v25, %v620_v42  ;;  %v1935_v44 = vpop.f32.mrb[6].mxu0  ;;  %1952 = vmatprep.mubr.bf16.mxu1 %v643_v40 }
 0x104   : > { %v632_v45 = vadd.f32 %v1935_v44, %v1789_v25  ;;  %v623_v46 = vpop.f32.mrb[7].mxu0  ;;  %1953 = vmatmul.mubr.bf16.vlgmr.msra.gmra.mrb[0].mxu1 %v644_v38  ;;  %v641_v48 = vmax.f32 %v629_v41, 0.0 }
 0x105   : > { %v624_v47 = vadd.f32 %v1789_v25, %v623_v46  ;;  %v639_v50 = vmax.f32 %v621_v43, 0.0  ;;  %1989 = vmatpush3.bf16.msra.mxu1 %v2135_v54 }
 0x106   : > { %v642_v49 = vmax.f32 %v632_v45, 0.0  ;;  %1990 = vmatprep.subr.bf16.mxu1 %v2252_v55 }
 0x107   : > { %v640_v51 = vmax.f32 %v624_v47, 0.0  ;;  %v2128_v47 = vld [vmem:[%s2712_s5 + $0x8] sm:$0xff]  }
 0x108   : > { %v646_v52 = vpack.c.bf16 %v642_v49, %v641_v48  ;;  %v2129_v48 = vld [vmem:[%s2712_s5 + $0x10] sm:$0xff]   ;;  %v2130_v49 = vld [vmem:[%s2712_s5 + $0x18] sm:$0xff]  }
 0x109   : > { %v645_v53 = vpack.c.bf16 %v640_v51, %v639_v50  ;;  %v2131_v50 = vld [vmem:[%s2714_s7] sm:$0xff]   ;;  %v2132_v51 = vld [vmem:[%s2714_s7 + $0x8] sm:$0xff]   ;;  %1991 = vmatpush3.bf16.msra.mxu1 %v2136_v56 }
 0x10a   : > { %1992 = vmatprep.subr.bf16.mxu1 %v2252_v55 }
 0x10b   : > { %1956 = vmatprep.mubr.bf16.mxu1 %v645_v53  ;;  %v2134_v53 = vld [vmem:[%s2714_s7 + $0x18] sm:$0xff]  }
 0x10c   : > { %1957 = vmatmul.mubr.bf16.gmra.mrb[4].mxu1 %v646_v52  ;;  %v2133_v52 = vld [vmem:[%s2714_s7 + $0x10] sm:$0xff]  }
 0x10d   : > { %1996 = vmatprep.mubr.msk.bf16.mxu1 %vm2253_vm3, %v2252_v55  ;;  %1993 = vmatpush3.bf16.msra.mxu1 %v2137_v57 }
 0x10e   : > { %1994 = vmatprep.subr.bf16.mxu1 %v2252_v55 }
 0x111   : > { %1995 = vmatpush3.bf16.msra.mxu1 %v2138_v58 }
 0x112   : > { %2016 = vmatprep.subr.bf16.mxu1 %v2252_v55 }
 0x1d7   : > { %v1954_v61 = vpop.f32.mrb[0].mxu1 }
 0x1d8   : > { %v761_v62 = vadd.f32 %v1954_v61, %v1794_v60  ;;  %v752_v63 = vpop.f32.mrb[1].mxu1 }
 0x1d9   : > { %v753_v0 = vadd.f32 %v1794_v60, %v752_v63  ;;  %v1955_v1 = vpop.f32.mrb[2].mxu1 }
 0x1da   : > { %v764_v2 = vadd.f32 %v1955_v1, %v1794_v60  ;;  %v755_v3 = vpop.f32.mrb[3].mxu1  ;;  %v785_v5 = vmax.f32 %v761_v62, 0.0  ;;  %v901_v62 = vlaneseq }
 0x1db   : > { %v756_v4 = vadd.f32 %v1794_v60, %v755_v3  ;;  %v783_v7 = vmax.f32 %v753_v0, 0.0 }
 0x1dc   : > { %v786_v6 = vmax.f32 %v764_v2, 0.0  ;;  %v794_v21 = vsel %vm791_vm4, %v785_v5, -inf  ;;  %v902_v0 = vshrl.u32 %v901_v62, 7 }
 0x1dd   : > { %v784_v8 = vmax.f32 %v756_v4, 0.0  ;;  %v792_v24 = vsel %vm791_vm4, %v783_v7, -inf  ;;  %v1816_v4 = vld [vmem:[%s2713_s6] ss:$0 sm:$0xff] }
 0x1de   : > { %v830_v9 = vpack.c.bf16 %v786_v6, %v785_v5  ;;  %v795_v28 = vsel %vm791_vm4, %v786_v6, -inf  ;;  %v2505_v1 = vsub.s32 0, %v902_v0  ;;  %v2140_v0 = vld [vmem:[%s2716_s9 + $0x8] sm:$0xff]  }
 0x1df   : > { %v829_v10 = vpack.c.bf16 %v784_v8, %v783_v7  ;;  %v1958_v11 = vpop.f32.mrb[4].mxu1  ;;  %v793_v32 = vsel %vm791_vm4, %v784_v8, -inf }
 0x1e0   : > { %v777_v12 = vadd.f32 %v1958_v11, %v1794_v60  ;;  %v768_v13 = vpop.f32.mrb[5].mxu1 }
 0x1e1   : > { %v769_v14 = vadd.f32 %v1794_v60, %v768_v13  ;;  %v1959_v15 = vpop.f32.mrb[6].mxu1 }
 0x1e2   : > { %v789_v16 = vmax.f32 %v777_v12, 0.0  ;;  %v780_v17 = vadd.f32 %v1959_v15, %v1794_v60  ;;  %v771_v18 = vpop.f32.mrb[7].mxu1 }
 0x1e3   : > { %v787_v19 = vmax.f32 %v769_v14, 0.0  ;;  %v772_v20 = vadd.f32 %v1794_v60, %v771_v18 }
 0x1e4   : > { %v800_v22 = vsel %vm791_vm4, %v789_v16, -inf  ;;  %v790_v23 = vmax.f32 %v780_v17, 0.0 }
 0x1e5   : > { %v801_v25 = vmax.f32 %v794_v21, %v800_v22  ;;  %v796_v26 = vsel %vm791_vm4, %v787_v19, -inf  ;;  %v788_v27 = vmax.f32 %v772_v20, 0.0 }
 0x1e6   : > { %v797_v29 = vmax.f32 %v792_v24, %v796_v26  ;;  %v802_v30 = vsel %vm791_vm4, %v790_v23, -inf  ;;  %v832_v31 = vpack.c.bf16 %v790_v23, %v789_v16 }
 0x1e7   : > { %v803_v33 = vmax.f32 %v795_v28, %v802_v30  ;;  %v798_v34 = vsel %vm791_vm4, %v788_v27, -inf  ;;  %v831_v35 = vpack.c.bf16 %v788_v27, %v787_v19 }
 0x1e8   : > { %v799_v36 = vmax.f32 %v793_v32, %v798_v34 }
 0x1e9   : > { %v805_v37 = vmax.f32 %v801_v25, %v803_v33 }
 0x1ea   : > { %v804_v38 = vmax.f32 %v797_v29, %v799_v36 }
 0x1ec   : > { %v806_v39 = vmax.f32 %v804_v38, %v805_v37 }
 0x1ee   : > { %v807_v40 = vrot.slane %v806_v39, 4 }
 0x1f0   : > { %v808_v41 = vmax.f32 %v806_v39, %v807_v40 }
 0x1f2   : > { %v809_v42 = vrot.slane %v808_v41, 2 }
 0x1f4   : > { %v810_v43 = vmax.f32 %v808_v41, %v809_v42 }
 0x1f6   : > { %v811_v44 = vrot.slane %v810_v43, 1 }
 0x1f8   : > { %v812_v45 = vmax.f32 %v810_v43, %v811_v44 }
 0x1fa   : > { %v833_v46 = vpack.c.bf16 %v812_v45, %v812_v45 }
 0x1fc   : > { %1969 = vmatmul.mubr.msk.bf16.vlgmr.msra.gmra.mrb[8].mxu0 %vm791_vm4, %v833_v46 }
 0x1fd   : > { %1973 = vmatpush3.bf16.msra.mxu0 %v2127_v59  ;;  %1980 = vmatprep.mubr.msk.bf16.mxu0 %vm791_vm4, %v829_v10 }
 0x1fe   : > { %1974 = vmatprep.subr.bf16.mxu0 %v2128_v47 }
 0x201   : > { %1975 = vmatpush3.bf16.msra.mxu0 %v2128_v47 }
 0x202   : > { %1976 = vmatprep.subr.bf16.mxu0 %v2129_v48 }
 0x205   : > { %1977 = vmatpush3.bf16.msra.mxu0 %v2129_v48 }
 0x206   : > { %1978 = vmatprep.subr.bf16.mxu0 %v2130_v49 }
 0x209   : > { %1979 = vmatpush3.bf16.msra.mxu0 %v2130_v49 }
 0x20a   : > { %2000 = vmatprep.subr.bf16.mxu0 %v2131_v50 }
 0x20c   : > { %1981 = vmatmul.mubr.msk.bf16.vlgmr.msra.gmra.mrb[12].mxu0 %vm791_vm4, %v830_v9 }
 0x20d   : > { %1984 = vmatprep.mubr.msk.bf16.mxu0 %vm791_vm4, %v831_v35  ;;  %2001 = vmatpush3.bf16.msra.mxu0 %v2131_v50 }
 0x20e   : > { %2002 = vmatprep.subr.bf16.mxu0 %v2132_v51 }
 0x211   : > { %2003 = vmatpush3.bf16.msra.mxu0 %v2132_v51 }
 0x212   : > { %2004 = vmatprep.subr.bf16.mxu0 %v2133_v52 }
 0x214   : > { %1985 = vmatmul.mubr.msk.bf16.gmra.mrb[16].mxu0 %vm791_vm4, %v832_v31 }
 0x215   : > { %2005 = vmatpush3.bf16.msra.mxu0 %v2133_v52 }
 0x216   : > { %2006 = vmatprep.subr.bf16.mxu0 %v2134_v53 }
 0x219   : > { %2007 = vmatpush3.bf16.msra.mxu0 %v2134_v53 }
 0x2cf   : > { %v895_v59 = vpop.f32.mrb[8].mxu0 }
 0x2d0   : > { %v1970_v60 = vpop.f32.mrb[9].mxu0  ;;  %v904_v2 = vrot.slane %v895_v59, %v2505_v1 }
 0x2d1   : > { %v898_v61 = vpop.f32.mrb[10].mxu0 }
 0x2d2   : > { %v1971_v63 = vpop.f32.mrb[11].mxu0 }
 0x2d3   : > { %v2139_v63 = vld [vmem:[%s2716_s9] sm:$0xff]  }
 0x2d4   : > { %2028 = vmatprep.subr.bf16.mxu0 %v2139_v63 }
 0x2df   : > { %v1982_v3 = vpop.f32.mrb[12].mxu0 }
 0x2e0   : > { %v984_v5 = vadd.f32 %v1982_v3, %v904_v2  ;;  %v975_v6 = vpop.f32.mrb[13].mxu0  ;;  %v2142_v3 = vld [vmem:[%s2716_s9 + $0x18] sm:$0xff]  }
 0x2e1   : > { %v976_v7 = vadd.f32 %v975_v6, %v904_v2  ;;  %v1983_v8 = vpop.f32.mrb[14].mxu0  ;;  %v2145_v6 = vld [vmem:[%s2716_s9 + $0x30] sm:$0xff]  }
 0x2e2   : > { %v1015_v9 = vadd.f32 %v1816_v4, %v984_v5  ;;  %v987_v10 = vadd.f32 %v1983_v8, %v904_v2  ;;  %v978_v11 = vpop.f32.mrb[15].mxu0  ;;  %v2144_v5 = vld [vmem:[%s2716_s9 + $0x28] sm:$0xff]  }
 0x2e3   : > { %v1013_v12 = vadd.f32 %v1816_v4, %v976_v7  ;;  %v979_v13 = vadd.f32 %v978_v11, %v904_v2  ;;  %v2146_v7 = vld [vmem:[%s2716_s9 + $0x38] sm:$0xff]  }
 0x2e4   : > { %v1016_v14 = vadd.f32 %v1816_v4, %v987_v10  ;;  %v1023_v16 = vmax.f32 %v1015_v9, 0.0 }
 0x2e5   : > { %v1014_v15 = vadd.f32 %v1816_v4, %v979_v13  ;;  %v1021_v18 = vmax.f32 %v1013_v12, 0.0 }
 0x2e6   : > { %v1024_v17 = vmax.f32 %v1016_v14, 0.0  ;;  %v1031_v36 = vsel %vm791_vm4, %v1023_v16, -inf }
 0x2e7   : > { %v1022_v19 = vmax.f32 %v1014_v15, 0.0  ;;  %v1986_v20 = vpop.f32.mrb[16].mxu0  ;;  %v1029_v39 = vsel %vm791_vm4, %v1021_v18, -inf }
 0x2e8   : > { %v1067_v21 = vpack.c.bf16 %v1024_v17, %v1023_v16  ;;  %v1000_v22 = vadd.f32 %v1986_v20, %v904_v2  ;;  %v991_v23 = vpop.f32.mrb[17].mxu0  ;;  %v1032_v43 = vsel %vm791_vm4, %v1024_v17, -inf  ;;  %v1830_v20 = vld [vmem:[%s2715_s8] ss:$0 sm:$0xff] }
 0x2e9   : > { %v1066_v24 = vpack.c.bf16 %v1022_v19, %v1021_v18  ;;  %v992_v25 = vadd.f32 %v991_v23, %v904_v2  ;;  %v1987_v26 = vpop.f32.mrb[18].mxu0  ;;  %v1030_v47 = vsel %vm791_vm4, %v1022_v19, -inf }
 0x2ea   : > { %v1019_v27 = vadd.f32 %v1816_v4, %v1000_v22  ;;  %v1003_v28 = vadd.f32 %v1987_v26, %v904_v2  ;;  %v994_v29 = vpop.f32.mrb[19].mxu0 }
 0x2eb   : > { %v1017_v30 = vadd.f32 %v1816_v4, %v992_v25  ;;  %v995_v31 = vadd.f32 %v994_v29, %v904_v2  ;;  %2008 = vmatprep.mubr.msk.bf16.mxu0 %vm791_vm4, %v1066_v24  ;;  %v2141_v2 = vld [vmem:[%s2716_s9 + $0x10] sm:$0xff]  }
 0x2ec   : > { %v1027_v32 = vmax.f32 %v1019_v27, 0.0  ;;  %v1020_v33 = vadd.f32 %v1816_v4, %v1003_v28  ;;  %2009 = vmatmul.mubr.msk.bf16.vlgmr.msra.gmra.mrb[20].mxu0 %vm791_vm4, %v1067_v21 }
 0x2ed   : > { %v1025_v34 = vmax.f32 %v1017_v30, 0.0  ;;  %v1018_v35 = vadd.f32 %v1816_v4, %v995_v31  ;;  %2029 = vmatpush3.bf16.msra.mxu0 %v2139_v63  ;;  %v2143_v4 = vld [vmem:[%s2716_s9 + $0x20] sm:$0xff]  }
 0x2ee   : > { %v1037_v37 = vsel %vm791_vm4, %v1027_v32, -inf  ;;  %v1028_v38 = vmax.f32 %v1020_v33, 0.0  ;;  %2030 = vmatprep.subr.bf16.mxu0 %v2140_v0 }
 0x2ef   : > { %v1038_v40 = vmax.f32 %v1031_v36, %v1037_v37  ;;  %v1033_v41 = vsel %vm791_vm4, %v1025_v34, -inf  ;;  %v1026_v42 = vmax.f32 %v1018_v35, 0.0 }
 0x2f0   : > { %v1034_v44 = vmax.f32 %v1029_v39, %v1033_v41  ;;  %v1039_v45 = vsel %vm791_vm4, %v1028_v38, -inf  ;;  %v1069_v46 = vpack.c.bf16 %v1028_v38, %v1027_v32 }
 0x2f1   : > { %v1040_v48 = vmax.f32 %v1032_v43, %v1039_v45  ;;  %v1035_v49 = vsel %vm791_vm4, %v1026_v42, -inf  ;;  %v1068_v50 = vpack.c.bf16 %v1026_v42, %v1025_v34  ;;  %2031 = vmatpush3.bf16.msra.mxu0 %v2140_v0 }
 0x2f2   : > { %v1036_v51 = vmax.f32 %v1030_v47, %v1035_v49  ;;  %2032 = vmatprep.subr.bf16.mxu0 %v2141_v2 }
 0x2f3   : > { %v1042_v52 = vmax.f32 %v1038_v40, %v1040_v48  ;;  %2012 = vmatprep.mubr.msk.bf16.mxu0 %vm791_vm4, %v1068_v50 }
 0x2f4   : > { %v1041_v53 = vmax.f32 %v1034_v44, %v1036_v51  ;;  %2013 = vmatmul.mubr.msk.bf16.gmra.mrb[24].mxu0 %vm791_vm4, %v1069_v46 }
 0x2f5   : > { %2033 = vmatpush3.bf16.msra.mxu0 %v2141_v2 }
 0x2f6   : > { %v1043_v54 = vmax.f32 %v1041_v53, %v1042_v52  ;;  %2034 = vmatprep.subr.bf16.mxu0 %v2142_v3 }
 0x2f8   : > { %v1044_v56 = vrot.slane %v1043_v54, 4 }
 0x2f9   : > { %2035 = vmatpush3.bf16.msra.mxu0 %v2142_v3 }
 0x2fa   : > { %v1045_v57 = vmax.f32 %v1043_v54, %v1044_v56  ;;  %2056 = vmatprep.subr.bf16.mxu0 %v2252_v55 }
 0x2fc   : > { %v1046_v58 = vrot.slane %v1045_v57, 2 }
 0x2fe   : > { %v1047_v59 = vmax.f32 %v1045_v57, %v1046_v58 }
 0x300   : > { %v1048_v60 = vrot.slane %v1047_v59, 1 }
 0x302   : > { %v1049_v61 = vmax.f32 %v1047_v59, %v1048_v60 }
 0x304   : > { %v1070_v62 = vpack.c.bf16 %v1049_v61, %v1049_v61 }
 0x306   : > { %1997 = vmatmul.mubr.msk.bf16.vlgmr.msra.gmra.mrb[8].mxu1 %vm791_vm4, %v1070_v62 }
 0x307   : > { %2024 = vmatprep.mubr.msk.bf16.mxu1 %vm2253_vm3, %v2252_v55  ;;  %2017 = vmatpush3.bf16.msra.mxu1 %v2143_v4 }
 0x308   : > { %2018 = vmatprep.subr.bf16.mxu1 %v2252_v55 }
 0x30b   : > { %2019 = vmatpush3.bf16.msra.mxu1 %v2144_v5 }
 0x30c   : > { %2020 = vmatprep.subr.bf16.mxu1 %v2252_v55 }
 0x30f   : > { %2021 = vmatpush3.bf16.msra.mxu1 %v2145_v6 }
 0x310   : > { %2022 = vmatprep.subr.bf16.mxu1 %v2252_v55 }
 0x313   : > { %2023 = vmatpush3.bf16.msra.mxu1 %v2146_v7 }
 0x314   : > { %2044 = vmatprep.subr.bf16.mxu1 %v2252_v55 }
 0x3bf   : > { %v2010_v8 = vpop.f32.mrb[20].mxu0 }
 0x3c0   : > { %v1212_v9 = vpop.f32.mrb[21].mxu0 }
 0x3c1   : > { %v2011_v10 = vpop.f32.mrb[22].mxu0 }
 0x3c2   : > { %v1215_v11 = vpop.f32.mrb[23].mxu0 }
 0x3c7   : > { %v2014_v12 = vpop.f32.mrb[24].mxu0 }
 0x3c8   : > { %v1228_v13 = vpop.f32.mrb[25].mxu0 }
 0x3c9   : > { %v2015_v14 = vpop.f32.mrb[26].mxu0 }
 0x3ca   : > { %v1231_v15 = vpop.f32.mrb[27].mxu0 }
 0x3d9   : > { %v1132_v16 = vpop.f32.mrb[8].mxu1 }
 0x3da   : > { %v1141_v17 = vrot.slane %v1132_v16, %v2505_v1  ;;  %v1998_v18 = vpop.f32.mrb[9].mxu1  ;;  %v2153_v16 = vld [vmem:[%s2720_s13 + $0x18] sm:$0xff]  }
 0x3db   : > { %v1135_v19 = vpop.f32.mrb[10].mxu1 }
 0x3dc   : > { %v1999_v21 = vpop.f32.mrb[11].mxu1  ;;  %v1213_v22 = vadd.f32 %v1212_v9, %v1141_v17  ;;  %v1216_v23 = vadd.f32 %v1215_v11, %v1141_v17  ;;  %v1221_v24 = vadd.f32 %v2010_v8, %v1141_v17  ;;  %v1224_v25 = vadd.f32 %v2011_v10, %v1141_v17  ;;  %v2147_v10 = vld [vmem:[%s2720_s13] sm:$0xff]  }
 0x3dd   : > { %v1229_v26 = vadd.f32 %v1228_v13, %v1141_v17  ;;  %v1232_v27 = vadd.f32 %v1231_v15, %v1141_v17  ;;  %v1237_v28 = vadd.f32 %v2014_v12, %v1141_v17  ;;  %v1240_v29 = vadd.f32 %v2015_v14, %v1141_v17  ;;  %v2148_v11 = vld [vmem:[%s2718_s11] sm:$0xff]   ;;  %v2149_v12 = vld [vmem:[%s2720_s13 + $0x8] sm:$0xff]   ;;  %v2151_v14 = vld [vmem:[%s2720_s13 + $0x10] sm:$0xff]  }
 0x3de   : > { %v1250_v30 = vadd.f32 %v1830_v20, %v1213_v22  ;;  %v1251_v31 = vadd.f32 %v1830_v20, %v1216_v23  ;;  %v1252_v32 = vadd.f32 %v1830_v20, %v1221_v24  ;;  %v1253_v33 = vadd.f32 %v1830_v20, %v1224_v25  ;;  %v2150_v13 = vld [vmem:[%s2718_s11 + $0x8] sm:$0xff]   ;;  %v2152_v15 = vld [vmem:[%s2718_s11 + $0x10] sm:$0xff]   ;;  %v2154_v17 = vld [vmem:[%s2718_s11 + $0x18] sm:$0xff]  }
 0x3df   : > { %v1254_v34 = vadd.f32 %v1830_v20, %v1229_v26  ;;  %v1255_v35 = vadd.f32 %v1830_v20, %v1232_v27  ;;  %v1256_v36 = vadd.f32 %v1830_v20, %v1237_v28  ;;  %v1257_v37 = vadd.f32 %v1830_v20, %v1240_v29 }
 0x3e0   : > { %v1258_v38 = vmax.f32 %v1250_v30, 0.0  ;;  %v1259_v39 = vmax.f32 %v1251_v31, 0.0  ;;  %v1260_v40 = vmax.f32 %v1252_v32, 0.0  ;;  %v1261_v41 = vmax.f32 %v1253_v33, 0.0  ;;  %v1844_v30 = vld [vmem:[%s2717_s10] ss:$0 sm:$0xff] }
 0x3e1   : > { %v1262_v42 = vmax.f32 %v1254_v34, 0.0  ;;  %v1263_v43 = vmax.f32 %v1255_v35, 0.0  ;;  %v1264_v44 = vmax.f32 %v1256_v36, 0.0  ;;  %v1265_v45 = vmax.f32 %v1257_v37, 0.0 }
 0x3e2   : > { %v1266_v46 = vsel %vm791_vm4, %v1258_v38, -inf  ;;  %v1267_v47 = vsel %vm791_vm4, %v1259_v39, -inf  ;;  %v1303_v48 = vpack.c.bf16 %v1259_v39, %v1258_v38  ;;  %v1304_v49 = vpack.c.bf16 %v1261_v41, %v1260_v40 }
 0x3e3   : > { %v1270_v50 = vsel %vm791_vm4, %v1262_v42, -inf  ;;  %v1272_v51 = vsel %vm791_vm4, %v1263_v43, -inf  ;;  %v1305_v52 = vpack.c.bf16 %v1263_v43, %v1262_v42  ;;  %v1268_v53 = vsel %vm791_vm4, %v1260_v40, -inf }
 0x3e4   : > { %2036 = vmatprep.mubr.msk.bf16.mxu0 %vm791_vm4, %v1303_v48  ;;  %v1271_v54 = vmax.f32 %v1266_v46, %v1270_v50  ;;  %v1273_v56 = vmax.f32 %v1267_v47, %v1272_v51  ;;  %v1269_v57 = vsel %vm791_vm4, %v1261_v41, -inf  ;;  %v1274_v58 = vsel %vm791_vm4, %v1264_v44, -inf }
 0x3e5   : > { %2037 = vmatmul.mubr.msk.bf16.vlgmr.msra.gmra.mrb[28].mxu0 %vm791_vm4, %v1304_v49  ;;  %v1275_v59 = vmax.f32 %v1268_v53, %v1274_v58  ;;  %v1276_v60 = vsel %vm791_vm4, %v1265_v45, -inf  ;;  %v1306_v61 = vpack.c.bf16 %v1265_v45, %v1264_v44 }
 0x3e6   : > { %v1278_v62 = vmax.f32 %v1271_v54, %v1273_v56  ;;  %2040 = vmatprep.mubr.msk.bf16.mxu0 %vm791_vm4, %v1305_v52  ;;  %v1277_v63 = vmax.f32 %v1269_v57, %v1276_v60  ;;  %2057 = vmatpush3.bf16.msra.mxu0 %v2147_v10 }
 0x3e7   : > { %2058 = vmatprep.subr.bf16.mxu0 %v2252_v55 }
 0x3e8   : > { %v1279_v0 = vmax.f32 %v1275_v59, %v1277_v63 }
 0x3ea   : > { %v1280_v2 = vmax.f32 %v1278_v62, %v1279_v0  ;;  %2059 = vmatpush3.bf16.msra.mxu0 %v2149_v12 }
 0x3eb   : > { %2060 = vmatprep.subr.bf16.mxu0 %v2252_v55 }
 0x3ec   : > { %v1281_v3 = vrot.slane %v1280_v2, 4 }
 0x3ed   : > { %2041 = vmatmul.mubr.msk.bf16.gmra.mrb[32].mxu0 %vm791_vm4, %v1306_v61 }
 0x3ee   : > { %v1282_v4 = vmax.f32 %v1280_v2, %v1281_v3  ;;  %2064 = vmatprep.mubr.msk.bf16.mxu0 %vm2253_vm3, %v2252_v55  ;;  %2061 = vmatpush3.bf16.msra.mxu0 %v2151_v14 }
 0x3ef   : > { %2062 = vmatprep.subr.bf16.mxu0 %v2252_v55 }
 0x3f0   : > { %v1283_v5 = vrot.slane %v1282_v4, 2 }
 0x3f2   : > { %v1284_v6 = vmax.f32 %v1282_v4, %v1283_v5  ;;  %2063 = vmatpush3.bf16.msra.mxu0 %v2153_v16 }
 0x3f4   : > { %v1285_v7 = vrot.slane %v1284_v6, 1 }
 0x3f6   : > { %v1286_v8 = vmax.f32 %v1284_v6, %v1285_v7  ;;  %v1526_v7 = vld [vmem:[%s2719_s12] sm:$0x1] }
 0x3f8   : > { %v1307_v9 = vpack.c.bf16 %v1286_v8, %v1286_v8  ;;  %v1604_v8 = vld [vmem:[%s2721_s14] sm:$0x1] }
 0x3fa   : > { %2025 = vmatmul.mubr.msk.bf16.vlgmr.msra.gmra.mrb[12].mxu1 %vm791_vm4, %v1307_v9 }
 0x3fb   : > { %2052 = vmatprep.mubr.msk.bf16.mxu1 %vm2253_vm3, %v2252_v55  ;;  %2045 = vmatpush3.bf16.msra.mxu1 %v2148_v11 }
 0x3fc   : > { %2046 = vmatprep.subr.bf16.mxu1 %v2252_v55 }
 0x3ff   : > { %2047 = vmatpush3.bf16.msra.mxu1 %v2150_v13 }
 0x400   : > { %2048 = vmatprep.subr.bf16.mxu1 %v2252_v55 }
 0x403   : > { %2049 = vmatpush3.bf16.msra.mxu1 %v2152_v15 }
 0x404   : > { %2050 = vmatprep.subr.bf16.mxu1 %v2252_v55 }
 0x407   : > { %2051 = vmatpush3.bf16.msra.mxu1 %v2154_v17 }
 0x4b8   : > { %v2038_v18 = vpop.f32.mrb[28].mxu0 }
 0x4b9   : > { %v1449_v19 = vpop.f32.mrb[29].mxu0 }
 0x4ba   : > { %v2039_v20 = vpop.f32.mrb[30].mxu0 }
 0x4bb   : > { %v1452_v21 = vpop.f32.mrb[31].mxu0 }
 0x4c0   : > { %v2042_v22 = vpop.f32.mrb[32].mxu0 }
 0x4c1   : > { %v1465_v23 = vpop.f32.mrb[33].mxu0 }
 0x4c2   : > { %v2043_v24 = vpop.f32.mrb[34].mxu0 }
 0x4c3   : > { %v1468_v25 = vpop.f32.mrb[35].mxu0 }
 0x4cd   : > { %v1369_v26 = vpop.f32.mrb[12].mxu1 }
 0x4ce   : > { %v1378_v27 = vrot.slane %v1369_v26, %v2505_v1  ;;  %v2026_v28 = vpop.f32.mrb[13].mxu1 }
 0x4cf   : > { %v1372_v29 = vpop.f32.mrb[14].mxu1 }
 0x4d0   : > { %v2027_v55 = vpop.f32.mrb[15].mxu1  ;;  %v1450_v31 = vadd.f32 %v1449_v19, %v1378_v27  ;;  %v1458_v32 = vadd.f32 %v2038_v18, %v1378_v27  ;;  %v1453_v33 = vadd.f32 %v1452_v21, %v1378_v27  ;;  %v1461_v34 = vadd.f32 %v2039_v20, %v1378_v27 }
 0x4d1   : > { %v1466_v35 = vadd.f32 %v1465_v23, %v1378_v27  ;;  %v1474_v36 = vadd.f32 %v2042_v22, %v1378_v27  ;;  %v1469_v37 = vadd.f32 %v1468_v25, %v1378_v27  ;;  %v1477_v38 = vadd.f32 %v2043_v24, %v1378_v27 }
 0x4d2   : > { %v1487_v39 = vadd.f32 %v1844_v30, %v1450_v31  ;;  %v1488_v40 = vadd.f32 %v1844_v30, %v1453_v33  ;;  %v1489_v41 = vadd.f32 %v1844_v30, %v1458_v32  ;;  %v1490_v42 = vadd.f32 %v1844_v30, %v1461_v34 }
 0x4d3   : > { %v1491_v1 = vadd.f32 %v1844_v30, %v1466_v35  ;;  %v1492_v43 = vadd.f32 %v1844_v30, %v1469_v37  ;;  %v1493_v44 = vadd.f32 %v1844_v30, %v1474_v36  ;;  %v1494_v45 = vadd.f32 %v1844_v30, %v1477_v38 }
 0x4d4   : > { %v1495_v46 = vsel %vm791_vm4, %v1487_v39, -inf  ;;  %v1496_v47 = vsel %vm791_vm4, %v1488_v40, -inf  ;;  %v1497_v48 = vsel %vm791_vm4, %v1489_v41, -inf  ;;  %v1498_v49 = vsel %vm791_vm4, %v1490_v42, -inf }
 0x4d5   : > { %v1499_v50 = vsel %vm791_vm4, %v1491_v1, -inf  ;;  %v1501_v51 = vsel %vm791_vm4, %v1492_v43, -inf  ;;  %v1503_v52 = vsel %vm791_vm4, %v1493_v44, -inf  ;;  %v1505_v53 = vsel %vm791_vm4, %v1494_v45, -inf }
 0x4d6   : > { %v1500_v54 = vmax.f32 %v1495_v46, %v1499_v50  ;;  %v1502_v56 = vmax.f32 %v1496_v47, %v1501_v51  ;;  %v1504_v57 = vmax.f32 %v1497_v48, %v1503_v52  ;;  %v1506_v58 = vmax.f32 %v1498_v49, %v1505_v53 }
 0x4d8   : > { %v1507_v59 = vmax.f32 %v1500_v54, %v1502_v56  ;;  %v1508_v60 = vmax.f32 %v1504_v57, %v1506_v58 }
 0x4da   : > { %v1509_v61 = vmax.f32 %v1507_v59, %v1508_v60 }
 0x4dc   : > { %v1510_v62 = vrot.slane %v1509_v61, 4 }
 0x4de   : > { %v1511_v63 = vmax.f32 %v1509_v61, %v1510_v62 }
 0x4e0   : > { %v1512_v0 = vrot.slane %v1511_v63, 2 }
 0x4e2   : > { %v1513_v2 = vmax.f32 %v1511_v63, %v1512_v0 }
 0x4e4   : > { %v1514_v3 = vrot.slane %v1513_v2, 1 }
 0x4e6   : > { %v1515_v4 = vmax.f32 %v1513_v2, %v1514_v3 }
 0x4e8   : > { %v1516_v5 = vmax.f32 %v1515_v4, 0.0 }
 0x4ea   : > { %v1517_v6 = vpack.c.bf16 %v1516_v5, %v1516_v5 }
 0x4ec   : > { %2053 = vmatmul.mubr.msk.bf16.vlgmr.msra.gmra.mrb[16].mxu1 %vm791_vm4, %v1517_v6  ;;  %2065 = vmatmul.mubr.msk.bf16.vlgmr.msra.gmra.mrb[36].mxu0 %vm791_vm4, %v1517_v6 }
 0x5bf   : > { %v1588_v9 = vpop.f32.mrb[16].mxu1  ;;  %v1663_v10 = vpop.f32.mrb[36].mxu0 }
 0x5c0   : > { %v1589_v11 = vadd.f32 %v1588_v9, %v1526_v7  ;;  %v1664_v12 = vadd.f32 %v1663_v10, %v1604_v8  ;;  %v2054_v13 = vpop.f32.mrb[17].mxu1  ;;  %v2066_v14 = vpop.f32.mrb[37].mxu0 }
 0x5c1   : > { %v1591_v15 = vpop.f32.mrb[18].mxu1  ;;  %v1666_v16 = vpop.f32.mrb[38].mxu0 }
 0x5c2   : > { %v2055_v17 = vpop.f32.mrb[19].mxu1  ;;  %v2067_v18 = vpop.f32.mrb[39].mxu0  ;;  %1595 = vst.msk [vmem:[%s517_s27] sm:$0x1] %vm1594_vm5, %v1589_v11  ;;  %1669 = vst.msk [vmem:[%s523_s28] sm:$0x1] %vm1594_vm5, %v1664_v12 }
 0x5c3   : > { %2168 = shalt.err (!%p2165_p3)
}
 0x5c4   : > { %s2169_s1 = scalar_lea.hbm %s2635_s25, 16  ;;  %s2173_s21 = scalar_lea.hbm %s2722_s15, 32 }
 0x5c5   : > { %p2170_p4 = scmp.ne.s32.totalorder %s2635_s25, %s2169_s1  ;;  %p2174_p9 = scmp.lt.u32.totalorder %s2635_s25, %s2722_s15 }
 0x5c6   : > { %p2175_p10 = scmp.lt.u32.totalorder %s2173_s21, %s2169_s1  ;;  %p2177_p12 = scmp.lt.u32.totalorder %s2169_s1, %s2635_s25 }
 0x5c7   : > { %p2171_p7 = pnand %p2170_p4, %p2379_p5 }
 0x5c8   : > { %p2176_p11 = por %p2175_p10, %p2174_p9 }
 0x5c9   : > { %p2172_p8 = pneg %p2171_p7 }
 0x5ca   : > { %p2178_p13 = por %p2177_p12, %p2176_p11 }
 0x5cc   : > { %p2179_p0 = pnand %p2178_p13, %p2172_p8 }
 0x5ce   : > { %2182 = shalt.err (!%p2179_p0)
}
 0x5cf   : > { %2068 = dma.vmem_to_hbm [thread:$0]  (%p2379_p5), %s2637_s26, 16, %s2635_s25, %s1671_s20  }
 0x5d0   : > { %s1675_s3 = scalar_lea.sflag [#allocation5], %s2621_s30  ;;  %s2183_s18 = scalar_lea.vmem %s2644_s29, 16 }
 0x5d1   : > { %p2184_p1 = scmp.ne.s32.totalorder %s2644_s29, %s2183_s18  ;;  %s2255_s19 = smov [#allocation4]  }
 0x5d2   : > { %s2187_s1 = sshll.u32 %s2255_s19, 4  ;;  %s2188_s1 = int_to_ptr.vmem [resolvable:$false] %s2187_s1 }
 0x5d3   : > { %p2185_p2 = pnand %p2184_p1, %p2379_p5  ;;  %s2189_s27 = scalar_lea.vmem %s2188_s1, 32 }
 0x5d4   : > { %p2190_p4 = scmp.lt.s32.totalorder %s2644_s29, %s2188_s1  ;;  %p2191_p7 = scmp.lt.s32.totalorder %s2189_s27, %s2183_s18 }
 0x5d5   : > { %p2186_p3 = pneg %p2185_p2 }
 0x5d6   : > { %p2192_p8 = por %p2191_p7, %p2190_p4 }
 0x5d8   : > { %p2193_p9 = pnand %p2192_p8, %p2186_p3 }
 0x5da   : > { %2196 = shalt.err (!%p2193_p9)
}
 0x5db   : > { %s2197_s30 = scalar_lea.hbm %s2642_s17, 16  ;;  %s2201_s20 = scalar_lea.hbm %s2723_s16, 32 }
 0x5dc   : > { %p2198_p10 = scmp.ne.s32.totalorder %s2642_s17, %s2197_s30  ;;  %p2202_p13 = scmp.lt.u32.totalorder %s2642_s17, %s2723_s16 }
 0x5dd   : > { %p2203_p0 = scmp.lt.u32.totalorder %s2201_s20, %s2197_s30  ;;  %p2205_p2 = scmp.lt.u32.totalorder %s2197_s30, %s2642_s17 }
 0x5de   : > { %p2199_p11 = pnand %p2198_p10, %p2379_p5 }
 0x5df   : > { %p2204_p1 = por %p2203_p0, %p2202_p13 }
 0x5e0   : > { %p2200_p12 = pneg %p2199_p11 }
 0x5e1   : > { %p2206_p3 = por %p2205_p2, %p2204_p1 }
 0x5e3   : > { %p2207_p4 = pnand %p2206_p3, %p2200_p12 }
 0x5e5   : > { %2210 = shalt.err (!%p2207_p4)
}
 0x5e6   : > { %2069 = dma.vmem_to_hbm [thread:$0]  (%p2379_p5), %s2644_s29, 16, %s2642_s17, %s1675_s3  }
 0x5e7 PF: > { %s2744_s23 = sld [smem:[#allocation8_spill]]  ;;  %p2079_p7 = scmp.ge.s32.totalorder %s2249_s24, 2 }
 0x5e9   : > { %p2073_p8 = pnand %p2079_p7, %p2383_p6 }
 0x5ed   : > { %s1712_s18 = sand.u32 1, %s2744_s23  }
 0x5ee   : > { %s1713_s19 = scalar_lea.sflag [#allocation3], %s1712_s18 }
 0x5ef   : > { %2228 = dma.done.wait (!%p2073_p8), %s1713_s19, 16  }
 0x5f0   : > { %2230 = vsyncadd (!%p2073_p8), %s1713_s19, 4294967280  ;;  %s1721_s1 = scalar_lea.sflag [#allocation5], %s1712_s18 }
 0x5f1   : > { %2232 = dma.done.wait (!%p2073_p8), %s1721_s1, 16  }
 0x5f2   : > { %2234 = vsyncadd (!%p2073_p8), %s1721_s1, 4294967280  ;;  %s2746_s24 = sld [smem:[#allocation10_spill]]  ;;  %s2747_s0 = sld [smem:[#allocation9_spill]] }
 0x5f3   : > { %s2748_s23 = sld [smem:[#allocation11_spill]]  ;;  %s2749_s21 = smov %s2241_s22 }
 0x5f8   : > { %p30_p5 = scmp.ge.s32.totalorder %s2746_s24, 4   ;;  %s2750_s22 = smov %s2747_s0 }
 0x5fa   :  { %32 = sbr.rel (!%p30_p5) target bundleno = 10 (0xa), region = 132 }
 0x601   :  { %1725 = vsyncpa [#allocation3], 1 }
 0x602   :  { %1727 = vsyncpa [#allocation3 + $0x1], 1 }
 0x603   :  { %1728 = vsyncpa [#allocation5], 1 }
 0x604   :  { %1730 = vsyncpa [#allocation5 + $0x1], 1 }

</bundles_post_ra>
